<compile_context>
chip_gen: v6e
topology: v6e:2x2x1
jax: 0.10.0
libtpu: 0.0.40
codegen_flags: <defaults>
</compile_context>

<pallas_src>
import functools
import math

import jax
import jax.numpy as jnp
from jax import lax
from jax.experimental import pallas as pl
from jax.experimental.pallas import tpu as pltpu

# ----- model hyper-parameters (small, consistent with the module) -----
B = 2            # batch
S = 8            # sequence length
IN = 4           # input_size
D = 32           # d_model
H = 4            # nhead
DH = D // H      # head dim
L = 2            # num_encoder_layers
DFF = 64         # dim_feedforward
OUT_LEN = 3      # output_len (self.fc is unused by forward)
EPS = 1e-5

NVEC = S + 4 * L   # rows of the packed f32 (NVEC, D) slab: pe | per-layer LN params


def _layernorm(x, w, b):
    mu = jnp.mean(x, axis=-1, keepdims=True)
    var = jnp.mean((x - mu) ** 2, axis=-1, keepdims=True)
    return (x - mu) * lax.rsqrt(var + EPS) * w + b


def transformer_kernel(x_ref, vecs_ref, emb_ref, w_qkv_ref, w_out_ref,
                       w_ff1_ref, w_ff2_ref, o_ref, *, bb):
    f32 = jnp.float32
    bf16 = jnp.bfloat16
    scale = 1.0 / math.sqrt(DH)
    BS = bb * S

    # positional encoding, replicated across the bb sequences stacked on sublanes
    pe = vecs_ref[0:S, :]                                               # (S, D) f32
    pe_full = pe if bb == 1 else jnp.concatenate([pe] * bb, axis=0)     # (BS, D)

    # ---- embedding: one (BS, IN) @ (IN, D) matmul ----
    x2 = x_ref[...].reshape(BS, IN).astype(bf16)                        # (BS, IN)
    emb_w = emb_ref[0:IN, :]                                            # (IN, D) bf16
    emb_b = emb_ref[IN:IN + 1, :].astype(f32)                           # (1, D)
    h = jnp.dot(x2, emb_w, preferred_element_type=f32) + emb_b + pe_full   # (BS, D) f32

    for l in range(L):                                                  # static unroll over layers
        base = S + 4 * l
        ln1_w = vecs_ref[base + 0:base + 1, :]
        ln1_b = vecs_ref[base + 1:base + 2, :]
        ln2_w = vecs_ref[base + 2:base + 3, :]
        ln2_b = vecs_ref[base + 3:base + 4, :]

        # ---- fused QKV projection: one (BS, D) @ (D, 3D) matmul per layer ----
        w_in = w_qkv_ref[l, 0:D, :]                                     # (D, 3D) bf16
        b_in = w_qkv_ref[l, D:D + 1, :].astype(f32)                     # (1, 3D)
        qkv = jnp.dot(h.astype(bf16), w_in, preferred_element_type=f32) + b_in   # (BS, 3D)
        qkv3 = qkv.reshape(bb, S, 3 * D)                                # per-sequence view
        q = qkv3[:, :, 0 * D:1 * D]                                     # (bb, S, D)
        k = qkv3[:, :, 1 * D:2 * D]
        v = qkv3[:, :, 2 * D:3 * D]

        # ---- multi-head attention: batched (over sequences) score / ctx matmuls per head ----
        ctx_heads = []
        for hh in range(H):                                             # static unroll over heads
            qh = q[:, :, hh * DH:(hh + 1) * DH].astype(bf16)            # (bb, S, DH)
            kh = k[:, :, hh * DH:(hh + 1) * DH].astype(bf16)
            vh = v[:, :, hh * DH:(hh + 1) * DH].astype(bf16)
            s = lax.dot_general(qh, kh, (((2,), (2,)), ((0,), (0,))),
                                preferred_element_type=f32) * scale     # (bb, S, S)
            s = s - jnp.max(s, axis=-1, keepdims=True)
            p = jnp.exp(s)
            p = p / jnp.sum(p, axis=-1, keepdims=True)                  # exact softmax division
            ctx_heads.append(
                lax.dot_general(p.astype(bf16), vh, (((2,), (1,)), ((0,), (0,))),
                                preferred_element_type=f32))            # (bb, S, DH)
        ctx = jnp.concatenate(ctx_heads, axis=-1).reshape(BS, D)        # (BS, D)

        # ---- fused output projection: one (BS, D) @ (D, D) matmul per layer ----
        w_o = w_out_ref[l, 0:D, :]                                      # (D, D) bf16
        b_o = w_out_ref[l, D:D + 1, :].astype(f32)                      # (1, D)
        attn = jnp.dot(ctx.astype(bf16), w_o, preferred_element_type=f32) + b_o

        h = _layernorm(h + attn, ln1_w, ln1_b)                          # (BS, D)

        # Final layer: only the last time step of each sequence feeds the FFN + LN2.
        if l == L - 1:
            h = h.reshape(bb, S, D)[:, S - 1:S, :].reshape(bb, D)       # (bb, D)

        # ---- feed-forward (bias stored as the trailing row of each weight slab) ----
        w1 = w_ff1_ref[l, 0:D, :]                                       # (D, DFF) bf16
        b1 = w_ff1_ref[l, D:D + 1, :].astype(f32)
        ff = jnp.maximum(jnp.dot(h.astype(bf16), w1, preferred_element_type=f32) + b1, 0.0)
        w2 = w_ff2_ref[l, 0:DFF, :]                                     # (DFF, D) bf16
        b2 = w_ff2_ref[l, DFF:DFF + 1, :].astype(f32)
        ff = jnp.dot(ff.astype(bf16), w2, preferred_element_type=f32) + b2
        h = _layernorm(h + ff, ln2_w, ln2_b)

    o_ref[...] = h.reshape(bb, 1, D)                                    # single direct store


def _pick_batch_block():
    # v7x has 2 TensorCores/chip: one grid step per core (bb = B//2) so both cores work.
    # Single-TC parts (v5e/v6e): collapse to one grid step — per-step overhead dominates here.
    # NOTE: this only changes the grid decomposition, never the math.
    try:
        kind = jax.devices()[0].device_kind.lower()
    except Exception:
        return B
    if "v7" in kind or "7x" in kind:
        return max(1, B // 2)
    return B


def pack_params(p):
    """Convert PyTorch-layout params into the kernel's packed, lane-dense layout (host side)."""
    f32, bf16 = jnp.float32, jnp.bfloat16

    rows = [p["pe"]]
    for l in range(L):
        rows += [p["ln1_w"][l].reshape(1, D), p["ln1_b"][l].reshape(1, D),
                 p["ln2_w"][l].reshape(1, D), p["ln2_b"][l].reshape(1, D)]
    vecs = jnp.concatenate(rows, axis=0).astype(f32)                     # (NVEC, D) f32

    emb = jnp.concatenate([p["emb_w"].T, p["emb_b"].reshape(1, D)], axis=0).astype(bf16)  # (IN+1, D)

    # in_proj_weight (L, 3D, D) -> lane-dense (L, D, 3D); bias appended as the last row.
    w_qkv = jnp.concatenate([jnp.transpose(p["in_proj_w"], (0, 2, 1)),
                             p["in_proj_b"].reshape(L, 1, 3 * D)], axis=1).astype(bf16)   # (L, D+1, 3D)

    # out_proj.weight (L, D, D): attn = ctx @ W^T + b  ->  store W^T with bias row.
    w_out = jnp.concatenate([jnp.transpose(p["out_w"], (0, 2, 1)),
                             p["out_b"].reshape(L, 1, D)], axis=1).astype(bf16)           # (L, D+1, D)

    w_ff1 = jnp.concatenate([jnp.transpose(p["ff1_w"], (0, 2, 1)),
                             p["ff1_b"].reshape(L, 1, DFF)], axis=1).astype(bf16)         # (L, D+1, DFF)
    w_ff2 = jnp.concatenate([jnp.transpose(p["ff2_w"], (0, 2, 1)),
                             p["ff2_b"].reshape(L, 1, D)], axis=1).astype(bf16)           # (L, DFF+1, D)
    return vecs, emb, w_qkv, w_out, w_ff1, w_ff2


def _cost_estimate():
    per_layer = (2 * B * S * D * 3 * D                  # fused QKV
                 + 2 * B * H * S * S * DH * 2           # scores + ctx
                 + 2 * B * S * D * D                    # output projection
                 + 2 * B * S * D * DFF * 2)             # FFN (approx; last layer is smaller)
    flops = 2 * B * S * IN * D + L * per_layer
    transcendentals = L * B * H * S * S + 2 * L * B * S
    weight_elems = ((IN + 1) * D
                    + L * ((D + 1) * 3 * D + (D + 1) * D + (D + 1) * DFF + (DFF + 1) * D))
    bytes_accessed = B * S * IN * 4 + B * D * 4 + NVEC * D * 4 + weight_elems * 2
    return pl.CostEstimate(flops=flops, transcendentals=transcendentals,
                           bytes_accessed=bytes_accessed)


def transformer_main(x, kparams, batch_block=None):
    vecs, emb, w_qkv, w_out, w_ff1, w_ff2 = kparams
    bb = _pick_batch_block() if batch_block is None else batch_block
    assert B % bb == 0

    def full(shape):
        nd = len(shape)
        return pl.BlockSpec(shape, lambda b, _n=nd: (0,) * _n)

    out = pl.pallas_call(
        functools.partial(transformer_kernel, bb=bb),
        out_shape=jax.ShapeDtypeStruct((B, 1, D), jnp.float32),
        grid_spec=pltpu.PrefetchScalarGridSpec(
            num_scalar_prefetch=0,
            grid=(B // bb,),
            in_specs=[
                pl.BlockSpec((bb, S, IN), lambda b: (b, 0, 0)),   # batch block of inputs
                full((NVEC, D)),                                  # pe + LN params (f32)
                full((IN + 1, D)),                                # embedding weight+bias (bf16)
                full((L, D + 1, 3 * D)),                          # fused QKV weight+bias (bf16)
                full((L, D + 1, D)),                              # out-proj weight+bias (bf16)
                full((L, D + 1, DFF)),                            # ff1 weight+bias (bf16)
                full((L, DFF + 1, D)),                            # ff2 weight+bias (bf16)
            ],
            out_specs=pl.BlockSpec((bb, 1, D), lambda b: (b, 0, 0)),
        ),
        compiler_params=pltpu.CompilerParams(dimension_semantics=("parallel",)),
        cost_estimate=_cost_estimate(),
    )(x, vecs, emb, w_qkv, w_out, w_ff1, w_ff2)
    return out[:, 0, :]                                           # (B, D)


def reference_jax(x, p):
    """Independent pure-JAX f32 reference written PyTorch-style (not sharing kernel math)."""
    def ln(t, w, b):
        mu = jnp.mean(t, axis=-1, keepdims=True)
        var = jnp.mean((t - mu) ** 2, axis=-1, keepdims=True)
        return (t - mu) / jnp.sqrt(var + EPS) * w + b

    h = jnp.einsum('bsi,di->bsd', x, p["emb_w"]) + p["emb_b"]
    h = h + p["pe"][None]
    for l in range(L):
        w_in, b_in = p["in_proj_w"][l], p["in_proj_b"][l]
        q = jnp.einsum('bsd,ed->bse', h, w_in[:D]) + b_in[:D]
        k = jnp.einsum('bsd,ed->bse', h, w_in[D:2 * D]) + b_in[D:2 * D]
        v = jnp.einsum('bsd,ed->bse', h, w_in[2 * D:]) + b_in[2 * D:]
        q = q.reshape(B, S, H, DH).transpose(0, 2, 1, 3)
        k = k.reshape(B, S, H, DH).transpose(0, 2, 1, 3)
        v = v.reshape(B, S, H, DH).transpose(0, 2, 1, 3)
        s = jnp.einsum('bhsd,bhtd->bhst', q, k) / math.sqrt(DH)
        a = jax.nn.softmax(s, axis=-1)
        ctx = jnp.einsum('bhst,bhtd->bhsd', a, v)
        ctx = ctx.transpose(0, 2, 1, 3).reshape(B, S, D)
        attn = jnp.einsum('bsd,ed->bse', ctx, p["out_w"][l]) + p["out_b"][l]
        h = ln(h + attn, p["ln1_w"][l], p["ln1_b"][l])
        ff = jax.nn.relu(jnp.einsum('bsd,fd->bsf', h, p["ff1_w"][l]) + p["ff1_b"][l])
        ff = jnp.einsum('bsf,df->bsd', ff, p["ff2_w"][l]) + p["ff2_b"][l]
        h = ln(h + ff, p["ln2_w"][l], p["ln2_b"][l])
    return h[:, -1, :]


def make_positional_encoding(seq_len, d_model):
    position = jnp.arange(seq_len, dtype=jnp.float32)[:, None]
    div_term = jnp.exp(jnp.arange(0, d_model, 2, dtype=jnp.float32)
                       * (-jnp.log(jnp.float32(10000.0)) / d_model))
    pe = jnp.zeros((seq_len, d_model), jnp.float32)
    pe = pe.at[:, 0::2].set(jnp.sin(position * div_term))
    pe = pe.at[:, 1::2].set(jnp.cos(position * div_term))
    return pe


def init_params(key):
    ks = jax.random.split(key, 12)
    sc = 0.05
    f32 = jnp.float32
    return {
        "pe": make_positional_encoding(S, D),
        # PyTorch nn.Linear layout: weight (out, in), bias (out,)
        "emb_w": sc * jax.random.normal(ks[0], (D, IN), f32),
        "emb_b": sc * jax.random.normal(ks[1], (D,), f32),
        "in_proj_w": sc * jax.random.normal(ks[2], (L, 3 * D, D), f32),
        "in_proj_b": sc * jax.random.normal(ks[3], (L, 3 * D), f32),
        "out_w": sc * jax.random.normal(ks[4], (L, D, D), f32),
        "out_b": sc * jax.random.normal(ks[5], (L, D), f32),
        "ln1_w": jnp.ones((L, D), f32), "ln1_b": jnp.zeros((L, D), f32),
        "ln2_w": jnp.ones((L, D), f32), "ln2_b": jnp.zeros((L, D), f32),
        "ff1_w": sc * jax.random.normal(ks[6], (L, DFF, D), f32),
        "ff1_b": sc * jax.random.normal(ks[7], (L, DFF), f32),
        "ff2_w": sc * jax.random.normal(ks[8], (L, D, DFF), f32),
        "ff2_b": sc * jax.random.normal(ks[9], (L, D), f32),
        # self.fc (d_model -> output_len) exists in __init__ but is NOT used by forward().
        "fc_w": sc * jax.random.normal(ks[10], (OUT_LEN, D), f32),
        "fc_b": sc * jax.random.normal(ks[11], (OUT_LEN,), f32),
    }


if __name__ == "__main__":
    key = jax.random.PRNGKey(0)
    kx, kp = jax.random.split(key)
    x = jax.random.normal(kx, (B, S, IN), jnp.float32)
    params = init_params(kp)

    kparams = pack_params(params)
    out = transformer_main(x, kparams)
    out = jax.block_until_ready(out)
    assert out.shape == (B, D), out.shape

    ref = reference_jax(x, params)
    max_err = float(jnp.max(jnp.abs(out - ref)))
    # Tolerance loosened vs pure-f32: MXU operands are bf16 (f32 accumulation).
    assert jnp.allclose(out, ref, rtol=2e-2, atol=2e-2), max_err

    print("KERNEL_OK")
</pallas_src>

<mosaic_0001>
module attributes {stable_mosaic.version = 11 : i64} {
  func.func @transformer_kernel(%arg0: i32, %arg1: memref<2x8x4xf32, #tpu.memory_space<vmem>>, %arg2: memref<16x32xf32, #tpu.memory_space<vmem>>, %arg3: memref<5x32xbf16, #tpu.memory_space<vmem>>, %arg4: memref<2x33x96xbf16, #tpu.memory_space<vmem>>, %arg5: memref<2x33x32xbf16, #tpu.memory_space<vmem>>, %arg6: memref<2x33x64xbf16, #tpu.memory_space<vmem>>, %arg7: memref<2x65x32xbf16, #tpu.memory_space<vmem>>, %arg8: memref<2x1x32xf32, #tpu.memory_space<vmem>>) attributes {dimension_semantics = [#tpu.dimension_semantics<parallel>], iteration_bounds = array<i64: 1>, scalar_prefetch = 0 : i64, scratch_operands = 0 : i64, tpu.core_type = #tpu.core_type<tc>, window_params = [{transform_indices = @transform_0, window_bounds = array<i64: 2, 8, 4>}, {pipeline_mode = #tpu.pipeline_mode<synchronous>, transform_indices = @transform_1, window_bounds = array<i64: 16, 32>}, {pipeline_mode = #tpu.pipeline_mode<synchronous>, transform_indices = @transform_2, window_bounds = array<i64: 5, 32>}, {pipeline_mode = #tpu.pipeline_mode<synchronous>, transform_indices = @transform_3, window_bounds = array<i64: 2, 33, 96>}, {pipeline_mode = #tpu.pipeline_mode<synchronous>, transform_indices = @transform_4, window_bounds = array<i64: 2, 33, 32>}, {pipeline_mode = #tpu.pipeline_mode<synchronous>, transform_indices = @transform_5, window_bounds = array<i64: 2, 33, 64>}, {pipeline_mode = #tpu.pipeline_mode<synchronous>, transform_indices = @transform_6, window_bounds = array<i64: 2, 65, 32>}, {transform_indices = @transform_7, window_bounds = array<i64: 2, 1, 32>}]} {
    %c0 = arith.constant 0 : index
    %c0_0 = arith.constant 0 : index
    %0 = vector.load %arg2[%c0, %c0_0] : memref<16x32xf32, #tpu.memory_space<vmem>>, vector<8x32xf32>
    %1 = tpu.concatenate %0, %0 in 0 : vector<8x32xf32>, vector<8x32xf32> -> vector<16x32xf32>
    %c0_1 = arith.constant 0 : index
    %c0_2 = arith.constant 0 : index
    %c0_3 = arith.constant 0 : index
    %2 = vector.load %arg1[%c0_1, %c0_2, %c0_3] : memref<2x8x4xf32, #tpu.memory_space<vmem>>, vector<2x8x4xf32>
    %3 = vector.shape_cast %2 : vector<2x8x4xf32> to vector<16x4xf32>
    %4 = arith.truncf %3 : vector<16x4xf32> to vector<16x4xbf16>
    %c0_4 = arith.constant 0 : index
    %c0_5 = arith.constant 0 : index
    %5 = vector.load %arg3[%c0_4, %c0_5] : memref<5x32xbf16, #tpu.memory_space<vmem>>, vector<4x32xbf16>
    %c4 = arith.constant 4 : index
    %c0_6 = arith.constant 0 : index
    %6 = vector.load %arg3[%c4, %c0_6] : memref<5x32xbf16, #tpu.memory_space<vmem>>, vector<1x32xbf16>
    %7 = arith.extf %6 : vector<1x32xbf16> to vector<1x32xf32>
    %cst = arith.constant dense<0.000000e+00> : vector<16x32xf32>
    %8 = tpu.matmul %4, %5, %cst {dimension_numbers = #tpu.dot_dimension_numbers<[1], [0], [0], [1], [0, 0, 1, 1], [], []>} : vector<16x4xbf16>, vector<4x32xbf16>, vector<16x32xf32> -> vector<16x32xf32>
    %9 = vector.broadcast %7 : vector<1x32xf32> to vector<16x32xf32>
    %10 = arith.addf %8, %9 : vector<16x32xf32>
    %11 = arith.addf %10, %1 : vector<16x32xf32>
    %c8 = arith.constant 8 : index
    %c0_7 = arith.constant 0 : index
    %12 = vector.load %arg2[%c8, %c0_7] : memref<16x32xf32, #tpu.memory_space<vmem>>, vector<1x32xf32>
    %c9 = arith.constant 9 : index
    %c0_8 = arith.constant 0 : index
    %13 = vector.load %arg2[%c9, %c0_8] : memref<16x32xf32, #tpu.memory_space<vmem>>, vector<1x32xf32>
    %c10 = arith.constant 10 : index
    %c0_9 = arith.constant 0 : index
    %14 = vector.load %arg2[%c10, %c0_9] : memref<16x32xf32, #tpu.memory_space<vmem>>, vector<1x32xf32>
    %c11 = arith.constant 11 : index
    %c0_10 = arith.constant 0 : index
    %15 = vector.load %arg2[%c11, %c0_10] : memref<16x32xf32, #tpu.memory_space<vmem>>, vector<1x32xf32>
    %c0_11 = arith.constant 0 : index
    %c0_12 = arith.constant 0 : index
    %c0_13 = arith.constant 0 : index
    %16 = vector.load %arg4[%c0_11, %c0_12, %c0_13] : memref<2x33x96xbf16, #tpu.memory_space<vmem>>, vector<1x32x96xbf16>
    %17 = vector.shape_cast %16 : vector<1x32x96xbf16> to vector<32x96xbf16>
    %c0_14 = arith.constant 0 : index
    %c32 = arith.constant 32 : index
    %c0_15 = arith.constant 0 : index
    %18 = vector.load %arg4[%c0_14, %c32, %c0_15] : memref<2x33x96xbf16, #tpu.memory_space<vmem>>, vector<1x1x96xbf16>
    %19 = vector.shape_cast %18 : vector<1x1x96xbf16> to vector<1x96xbf16>
    %20 = arith.extf %19 : vector<1x96xbf16> to vector<1x96xf32>
    %21 = arith.truncf %11 : vector<16x32xf32> to vector<16x32xbf16>
    %cst_16 = arith.constant dense<0.000000e+00> : vector<16x96xf32>
    %22 = tpu.matmul %21, %17, %cst_16 {dimension_numbers = #tpu.dot_dimension_numbers<[1], [0], [0], [1], [0, 0, 1, 1], [], []>} : vector<16x32xbf16>, vector<32x96xbf16>, vector<16x96xf32> -> vector<16x96xf32>
    %23 = vector.broadcast %20 : vector<1x96xf32> to vector<16x96xf32>
    %24 = arith.addf %22, %23 : vector<16x96xf32>
    %25 = vector.shape_cast %24 : vector<16x96xf32> to vector<2x8x96xf32>
    %26 = vector.extract_strided_slice %25 {offsets = [0, 0, 0], sizes = [2, 8, 32], strides = [1, 1, 1]} : vector<2x8x96xf32> to vector<2x8x32xf32>
    %27 = vector.extract_strided_slice %25 {offsets = [0, 0, 32], sizes = [2, 8, 32], strides = [1, 1, 1]} : vector<2x8x96xf32> to vector<2x8x32xf32>
    %28 = vector.extract_strided_slice %25 {offsets = [0, 0, 64], sizes = [2, 8, 32], strides = [1, 1, 1]} : vector<2x8x96xf32> to vector<2x8x32xf32>
    %29 = vector.extract_strided_slice %26 {offsets = [0, 0, 0], sizes = [2, 8, 8], strides = [1, 1, 1]} : vector<2x8x32xf32> to vector<2x8x8xf32>
    %30 = arith.truncf %29 : vector<2x8x8xf32> to vector<2x8x8xbf16>
    %31 = vector.extract_strided_slice %27 {offsets = [0, 0, 0], sizes = [2, 8, 8], strides = [1, 1, 1]} : vector<2x8x32xf32> to vector<2x8x8xf32>
    %32 = arith.truncf %31 : vector<2x8x8xf32> to vector<2x8x8xbf16>
    %33 = vector.extract_strided_slice %28 {offsets = [0, 0, 0], sizes = [2, 8, 8], strides = [1, 1, 1]} : vector<2x8x32xf32> to vector<2x8x8xf32>
    %34 = arith.truncf %33 : vector<2x8x8xf32> to vector<2x8x8xbf16>
    %cst_17 = arith.constant dense<0.000000e+00> : vector<2x8x8xf32>
    %35 = tpu.matmul %30, %32, %cst_17 {dimension_numbers = #tpu.dot_dimension_numbers<[2], [2], [1], [1], [0, 0, 0, 1, 1, 1], [0], [0]>} : vector<2x8x8xbf16>, vector<2x8x8xbf16>, vector<2x8x8xf32> -> vector<2x8x8xf32>
    %cst_18 = arith.constant 0.353553385 : f32
    %36 = vector.broadcast %cst_18 : f32 to vector<2x8x8xf32>
    %37 = arith.mulf %35, %36 : vector<2x8x8xf32>
    %cst_19 = arith.constant dense<0xFF800000> : vector<2x8xf32>
    %38 = vector.multi_reduction <maximumf>, %37, %cst_19 [2] : vector<2x8x8xf32> to vector<2x8xf32>
    %39 = vector.shape_cast %38 : vector<2x8xf32> to vector<2x8x1xf32>
    %40 = vector.broadcast %39 : vector<2x8x1xf32> to vector<2x8x8xf32>
    %41 = arith.subf %37, %40 : vector<2x8x8xf32>
    %42 = math.exp %41 : vector<2x8x8xf32>
    %cst_20 = arith.constant dense<0.000000e+00> : vector<2x8xf32>
    %43 = vector.multi_reduction <add>, %42, %cst_20 [2] : vector<2x8x8xf32> to vector<2x8xf32>
    %44 = vector.shape_cast %43 : vector<2x8xf32> to vector<2x8x1xf32>
    %45 = vector.broadcast %44 : vector<2x8x1xf32> to vector<2x8x8xf32>
    %46 = arith.divf %42, %45 : vector<2x8x8xf32>
    %47 = arith.truncf %46 : vector<2x8x8xf32> to vector<2x8x8xbf16>
    %cst_21 = arith.constant dense<0.000000e+00> : vector<2x8x8xf32>
    %48 = tpu.matmul %47, %34, %cst_21 {dimension_numbers = #tpu.dot_dimension_numbers<[2], [1], [1], [2], [0, 0, 0, 1, 1, 2], [0], [0]>} : vector<2x8x8xbf16>, vector<2x8x8xbf16>, vector<2x8x8xf32> -> vector<2x8x8xf32>
    %49 = vector.extract_strided_slice %26 {offsets = [0, 0, 8], sizes = [2, 8, 8], strides = [1, 1, 1]} : vector<2x8x32xf32> to vector<2x8x8xf32>
    %50 = arith.truncf %49 : vector<2x8x8xf32> to vector<2x8x8xbf16>
    %51 = vector.extract_strided_slice %27 {offsets = [0, 0, 8], sizes = [2, 8, 8], strides = [1, 1, 1]} : vector<2x8x32xf32> to vector<2x8x8xf32>
    %52 = arith.truncf %51 : vector<2x8x8xf32> to vector<2x8x8xbf16>
    %53 = vector.extract_strided_slice %28 {offsets = [0, 0, 8], sizes = [2, 8, 8], strides = [1, 1, 1]} : vector<2x8x32xf32> to vector<2x8x8xf32>
    %54 = arith.truncf %53 : vector<2x8x8xf32> to vector<2x8x8xbf16>
    %cst_22 = arith.constant dense<0.000000e+00> : vector<2x8x8xf32>
    %55 = tpu.matmul %50, %52, %cst_22 {dimension_numbers = #tpu.dot_dimension_numbers<[2], [2], [1], [1], [0, 0, 0, 1, 1, 1], [0], [0]>} : vector<2x8x8xbf16>, vector<2x8x8xbf16>, vector<2x8x8xf32> -> vector<2x8x8xf32>
    %cst_23 = arith.constant 0.353553385 : f32
    %56 = vector.broadcast %cst_23 : f32 to vector<2x8x8xf32>
    %57 = arith.mulf %55, %56 : vector<2x8x8xf32>
    %cst_24 = arith.constant dense<0xFF800000> : vector<2x8xf32>
    %58 = vector.multi_reduction <maximumf>, %57, %cst_24 [2] : vector<2x8x8xf32> to vector<2x8xf32>
    %59 = vector.shape_cast %58 : vector<2x8xf32> to vector<2x8x1xf32>
    %60 = vector.broadcast %59 : vector<2x8x1xf32> to vector<2x8x8xf32>
    %61 = arith.subf %57, %60 : vector<2x8x8xf32>
    %62 = math.exp %61 : vector<2x8x8xf32>
    %cst_25 = arith.constant dense<0.000000e+00> : vector<2x8xf32>
    %63 = vector.multi_reduction <add>, %62, %cst_25 [2] : vector<2x8x8xf32> to vector<2x8xf32>
    %64 = vector.shape_cast %63 : vector<2x8xf32> to vector<2x8x1xf32>
    %65 = vector.broadcast %64 : vector<2x8x1xf32> to vector<2x8x8xf32>
    %66 = arith.divf %62, %65 : vector<2x8x8xf32>
    %67 = arith.truncf %66 : vector<2x8x8xf32> to vector<2x8x8xbf16>
    %cst_26 = arith.constant dense<0.000000e+00> : vector<2x8x8xf32>
    %68 = tpu.matmul %67, %54, %cst_26 {dimension_numbers = #tpu.dot_dimension_numbers<[2], [1], [1], [2], [0, 0, 0, 1, 1, 2], [0], [0]>} : vector<2x8x8xbf16>, vector<2x8x8xbf16>, vector<2x8x8xf32> -> vector<2x8x8xf32>
    %69 = vector.extract_strided_slice %26 {offsets = [0, 0, 16], sizes = [2, 8, 8], strides = [1, 1, 1]} : vector<2x8x32xf32> to vector<2x8x8xf32>
    %70 = arith.truncf %69 : vector<2x8x8xf32> to vector<2x8x8xbf16>
    %71 = vector.extract_strided_slice %27 {offsets = [0, 0, 16], sizes = [2, 8, 8], strides = [1, 1, 1]} : vector<2x8x32xf32> to vector<2x8x8xf32>
    %72 = arith.truncf %71 : vector<2x8x8xf32> to vector<2x8x8xbf16>
    %73 = vector.extract_strided_slice %28 {offsets = [0, 0, 16], sizes = [2, 8, 8], strides = [1, 1, 1]} : vector<2x8x32xf32> to vector<2x8x8xf32>
    %74 = arith.truncf %73 : vector<2x8x8xf32> to vector<2x8x8xbf16>
    %cst_27 = arith.constant dense<0.000000e+00> : vector<2x8x8xf32>
    %75 = tpu.matmul %70, %72, %cst_27 {dimension_numbers = #tpu.dot_dimension_numbers<[2], [2], [1], [1], [0, 0, 0, 1, 1, 1], [0], [0]>} : vector<2x8x8xbf16>, vector<2x8x8xbf16>, vector<2x8x8xf32> -> vector<2x8x8xf32>
    %cst_28 = arith.constant 0.353553385 : f32
    %76 = vector.broadcast %cst_28 : f32 to vector<2x8x8xf32>
    %77 = arith.mulf %75, %76 : vector<2x8x8xf32>
    %cst_29 = arith.constant dense<0xFF800000> : vector<2x8xf32>
    %78 = vector.multi_reduction <maximumf>, %77, %cst_29 [2] : vector<2x8x8xf32> to vector<2x8xf32>
    %79 = vector.shape_cast %78 : vector<2x8xf32> to vector<2x8x1xf32>
    %80 = vector.broadcast %79 : vector<2x8x1xf32> to vector<2x8x8xf32>
    %81 = arith.subf %77, %80 : vector<2x8x8xf32>
    %82 = math.exp %81 : vector<2x8x8xf32>
    %cst_30 = arith.constant dense<0.000000e+00> : vector<2x8xf32>
    %83 = vector.multi_reduction <add>, %82, %cst_30 [2] : vector<2x8x8xf32> to vector<2x8xf32>
    %84 = vector.shape_cast %83 : vector<2x8xf32> to vector<2x8x1xf32>
    %85 = vector.broadcast %84 : vector<2x8x1xf32> to vector<2x8x8xf32>
    %86 = arith.divf %82, %85 : vector<2x8x8xf32>
    %87 = arith.truncf %86 : vector<2x8x8xf32> to vector<2x8x8xbf16>
    %cst_31 = arith.constant dense<0.000000e+00> : vector<2x8x8xf32>
    %88 = tpu.matmul %87, %74, %cst_31 {dimension_numbers = #tpu.dot_dimension_numbers<[2], [1], [1], [2], [0, 0, 0, 1, 1, 2], [0], [0]>} : vector<2x8x8xbf16>, vector<2x8x8xbf16>, vector<2x8x8xf32> -> vector<2x8x8xf32>
    %89 = vector.extract_strided_slice %26 {offsets = [0, 0, 24], sizes = [2, 8, 8], strides = [1, 1, 1]} : vector<2x8x32xf32> to vector<2x8x8xf32>
    %90 = arith.truncf %89 : vector<2x8x8xf32> to vector<2x8x8xbf16>
    %91 = vector.extract_strided_slice %27 {offsets = [0, 0, 24], sizes = [2, 8, 8], strides = [1, 1, 1]} : vector<2x8x32xf32> to vector<2x8x8xf32>
    %92 = arith.truncf %91 : vector<2x8x8xf32> to vector<2x8x8xbf16>
    %93 = vector.extract_strided_slice %28 {offsets = [0, 0, 24], sizes = [2, 8, 8], strides = [1, 1, 1]} : vector<2x8x32xf32> to vector<2x8x8xf32>
    %94 = arith.truncf %93 : vector<2x8x8xf32> to vector<2x8x8xbf16>
    %cst_32 = arith.constant dense<0.000000e+00> : vector<2x8x8xf32>
    %95 = tpu.matmul %90, %92, %cst_32 {dimension_numbers = #tpu.dot_dimension_numbers<[2], [2], [1], [1], [0, 0, 0, 1, 1, 1], [0], [0]>} : vector<2x8x8xbf16>, vector<2x8x8xbf16>, vector<2x8x8xf32> -> vector<2x8x8xf32>
    %cst_33 = arith.constant 0.353553385 : f32
    %96 = vector.broadcast %cst_33 : f32 to vector<2x8x8xf32>
    %97 = arith.mulf %95, %96 : vector<2x8x8xf32>
    %cst_34 = arith.constant dense<0xFF800000> : vector<2x8xf32>
    %98 = vector.multi_reduction <maximumf>, %97, %cst_34 [2] : vector<2x8x8xf32> to vector<2x8xf32>
    %99 = vector.shape_cast %98 : vector<2x8xf32> to vector<2x8x1xf32>
    %100 = vector.broadcast %99 : vector<2x8x1xf32> to vector<2x8x8xf32>
    %101 = arith.subf %97, %100 : vector<2x8x8xf32>
    %102 = math.exp %101 : vector<2x8x8xf32>
    %cst_35 = arith.constant dense<0.000000e+00> : vector<2x8xf32>
    %103 = vector.multi_reduction <add>, %102, %cst_35 [2] : vector<2x8x8xf32> to vector<2x8xf32>
    %104 = vector.shape_cast %103 : vector<2x8xf32> to vector<2x8x1xf32>
    %105 = vector.broadcast %104 : vector<2x8x1xf32> to vector<2x8x8xf32>
    %106 = arith.divf %102, %105 : vector<2x8x8xf32>
    %107 = arith.truncf %106 : vector<2x8x8xf32> to vector<2x8x8xbf16>
    %cst_36 = arith.constant dense<0.000000e+00> : vector<2x8x8xf32>
    %108 = tpu.matmul %107, %94, %cst_36 {dimension_numbers = #tpu.dot_dimension_numbers<[2], [1], [1], [2], [0, 0, 0, 1, 1, 2], [0], [0]>} : vector<2x8x8xbf16>, vector<2x8x8xbf16>, vector<2x8x8xf32> -> vector<2x8x8xf32>
    %109 = tpu.concatenate %48, %68, %88, %108 in 2 : vector<2x8x8xf32>, vector<2x8x8xf32>, vector<2x8x8xf32>, vector<2x8x8xf32> -> vector<2x8x32xf32>
    %110 = vector.shape_cast %109 : vector<2x8x32xf32> to vector<16x32xf32>
    %c0_37 = arith.constant 0 : index
    %c0_38 = arith.constant 0 : index
    %c0_39 = arith.constant 0 : index
    %111 = vector.load %arg5[%c0_37, %c0_38, %c0_39] : memref<2x33x32xbf16, #tpu.memory_space<vmem>>, vector<1x32x32xbf16>
    %112 = vector.shape_cast %111 : vector<1x32x32xbf16> to vector<32x32xbf16>
    %c0_40 = arith.constant 0 : index
    %c32_41 = arith.constant 32 : index
    %c0_42 = arith.constant 0 : index
    %113 = vector.load %arg5[%c0_40, %c32_41, %c0_42] : memref<2x33x32xbf16, #tpu.memory_space<vmem>>, vector<1x1x32xbf16>
    %114 = vector.shape_cast %113 : vector<1x1x32xbf16> to vector<1x32xbf16>
    %115 = arith.extf %114 : vector<1x32xbf16> to vector<1x32xf32>
    %116 = arith.truncf %110 : vector<16x32xf32> to vector<16x32xbf16>
    %cst_43 = arith.constant dense<0.000000e+00> : vector<16x32xf32>
    %117 = tpu.matmul %116, %112, %cst_43 {dimension_numbers = #tpu.dot_dimension_numbers<[1], [0], [0], [1], [0, 0, 1, 1], [], []>} : vector<16x32xbf16>, vector<32x32xbf16>, vector<16x32xf32> -> vector<16x32xf32>
    %118 = vector.broadcast %115 : vector<1x32xf32> to vector<16x32xf32>
    %119 = arith.addf %117, %118 : vector<16x32xf32>
    %120 = arith.addf %11, %119 : vector<16x32xf32>
    %cst_44 = arith.constant dense<0.000000e+00> : vector<16xf32>
    %121 = vector.multi_reduction <add>, %120, %cst_44 [1] : vector<16x32xf32> to vector<16xf32>
    %122 = vector.shape_cast %121 : vector<16xf32> to vector<16x1xf32>
    %cst_45 = arith.constant 3.200000e+01 : f32
    %123 = vector.broadcast %cst_45 : f32 to vector<16x1xf32>
    %124 = arith.divf %122, %123 : vector<16x1xf32>
    %125 = vector.broadcast %124 : vector<16x1xf32> to vector<16x32xf32>
    %126 = arith.subf %120, %125 : vector<16x32xf32>
    %127 = arith.mulf %126, %126 : vector<16x32xf32>
    %cst_46 = arith.constant dense<0.000000e+00> : vector<16xf32>
    %128 = vector.multi_reduction <add>, %127, %cst_46 [1] : vector<16x32xf32> to vector<16xf32>
    %129 = vector.shape_cast %128 : vector<16xf32> to vector<16x1xf32>
    %cst_47 = arith.constant 3.200000e+01 : f32
    %130 = vector.broadcast %cst_47 : f32 to vector<16x1xf32>
    %131 = arith.divf %129, %130 : vector<16x1xf32>
    %132 = vector.broadcast %124 : vector<16x1xf32> to vector<16x32xf32>
    %133 = arith.subf %120, %132 : vector<16x32xf32>
    %cst_48 = arith.constant 9.99999974E-6 : f32
    %134 = vector.broadcast %cst_48 : f32 to vector<16x1xf32>
    %135 = arith.addf %131, %134 : vector<16x1xf32>
    %136 = math.rsqrt %135 : vector<16x1xf32>
    %137 = vector.broadcast %136 : vector<16x1xf32> to vector<16x32xf32>
    %138 = arith.mulf %133, %137 : vector<16x32xf32>
    %139 = vector.broadcast %12 : vector<1x32xf32> to vector<16x32xf32>
    %140 = arith.mulf %138, %139 : vector<16x32xf32>
    %141 = vector.broadcast %13 : vector<1x32xf32> to vector<16x32xf32>
    %142 = arith.addf %140, %141 : vector<16x32xf32>
    %c0_49 = arith.constant 0 : index
    %c0_50 = arith.constant 0 : index
    %c0_51 = arith.constant 0 : index
    %143 = vector.load %arg6[%c0_49, %c0_50, %c0_51] : memref<2x33x64xbf16, #tpu.memory_space<vmem>>, vector<1x32x64xbf16>
    %144 = vector.shape_cast %143 : vector<1x32x64xbf16> to vector<32x64xbf16>
    %c0_52 = arith.constant 0 : index
    %c32_53 = arith.constant 32 : index
    %c0_54 = arith.constant 0 : index
    %145 = vector.load %arg6[%c0_52, %c32_53, %c0_54] : memref<2x33x64xbf16, #tpu.memory_space<vmem>>, vector<1x1x64xbf16>
    %146 = vector.shape_cast %145 : vector<1x1x64xbf16> to vector<1x64xbf16>
    %147 = arith.extf %146 : vector<1x64xbf16> to vector<1x64xf32>
    %148 = arith.truncf %142 : vector<16x32xf32> to vector<16x32xbf16>
    %cst_55 = arith.constant dense<0.000000e+00> : vector<16x64xf32>
    %149 = tpu.matmul %148, %144, %cst_55 {dimension_numbers = #tpu.dot_dimension_numbers<[1], [0], [0], [1], [0, 0, 1, 1], [], []>} : vector<16x32xbf16>, vector<32x64xbf16>, vector<16x64xf32> -> vector<16x64xf32>
    %150 = vector.broadcast %147 : vector<1x64xf32> to vector<16x64xf32>
    %151 = arith.addf %149, %150 : vector<16x64xf32>
    %cst_56 = arith.constant 0.000000e+00 : f32
    %152 = vector.broadcast %cst_56 : f32 to vector<16x64xf32>
    %153 = arith.maximumf %151, %152 : vector<16x64xf32>
    %c0_57 = arith.constant 0 : index
    %c0_58 = arith.constant 0 : index
    %c0_59 = arith.constant 0 : index
    %154 = vector.load %arg7[%c0_57, %c0_58, %c0_59] : memref<2x65x32xbf16, #tpu.memory_space<vmem>>, vector<1x64x32xbf16>
    %155 = vector.shape_cast %154 : vector<1x64x32xbf16> to vector<64x32xbf16>
    %c0_60 = arith.constant 0 : index
    %c64 = arith.constant 64 : index
    %c0_61 = arith.constant 0 : index
    %156 = vector.load %arg7[%c0_60, %c64, %c0_61] : memref<2x65x32xbf16, #tpu.memory_space<vmem>>, vector<1x1x32xbf16>
    %157 = vector.shape_cast %156 : vector<1x1x32xbf16> to vector<1x32xbf16>
    %158 = arith.extf %157 : vector<1x32xbf16> to vector<1x32xf32>
    %159 = arith.truncf %153 : vector<16x64xf32> to vector<16x64xbf16>
    %cst_62 = arith.constant dense<0.000000e+00> : vector<16x32xf32>
    %160 = tpu.matmul %159, %155, %cst_62 {dimension_numbers = #tpu.dot_dimension_numbers<[1], [0], [0], [1], [0, 0, 1, 1], [], []>} : vector<16x64xbf16>, vector<64x32xbf16>, vector<16x32xf32> -> vector<16x32xf32>
    %161 = vector.broadcast %158 : vector<1x32xf32> to vector<16x32xf32>
    %162 = arith.addf %160, %161 : vector<16x32xf32>
    %163 = arith.addf %142, %162 : vector<16x32xf32>
    %cst_63 = arith.constant dense<0.000000e+00> : vector<16xf32>
    %164 = vector.multi_reduction <add>, %163, %cst_63 [1] : vector<16x32xf32> to vector<16xf32>
    %165 = vector.shape_cast %164 : vector<16xf32> to vector<16x1xf32>
    %cst_64 = arith.constant 3.200000e+01 : f32
    %166 = vector.broadcast %cst_64 : f32 to vector<16x1xf32>
    %167 = arith.divf %165, %166 : vector<16x1xf32>
    %168 = vector.broadcast %167 : vector<16x1xf32> to vector<16x32xf32>
    %169 = arith.subf %163, %168 : vector<16x32xf32>
    %170 = arith.mulf %169, %169 : vector<16x32xf32>
    %cst_65 = arith.constant dense<0.000000e+00> : vector<16xf32>
    %171 = vector.multi_reduction <add>, %170, %cst_65 [1] : vector<16x32xf32> to vector<16xf32>
    %172 = vector.shape_cast %171 : vector<16xf32> to vector<16x1xf32>
    %cst_66 = arith.constant 3.200000e+01 : f32
    %173 = vector.broadcast %cst_66 : f32 to vector<16x1xf32>
    %174 = arith.divf %172, %173 : vector<16x1xf32>
    %175 = vector.broadcast %167 : vector<16x1xf32> to vector<16x32xf32>
    %176 = arith.subf %163, %175 : vector<16x32xf32>
    %cst_67 = arith.constant 9.99999974E-6 : f32
    %177 = vector.broadcast %cst_67 : f32 to vector<16x1xf32>
    %178 = arith.addf %174, %177 : vector<16x1xf32>
    %179 = math.rsqrt %178 : vector<16x1xf32>
    %180 = vector.broadcast %179 : vector<16x1xf32> to vector<16x32xf32>
    %181 = arith.mulf %176, %180 : vector<16x32xf32>
    %182 = vector.broadcast %14 : vector<1x32xf32> to vector<16x32xf32>
    %183 = arith.mulf %181, %182 : vector<16x32xf32>
    %184 = vector.broadcast %15 : vector<1x32xf32> to vector<16x32xf32>
    %185 = arith.addf %183, %184 : vector<16x32xf32>
    %c12 = arith.constant 12 : index
    %c0_68 = arith.constant 0 : index
    %186 = vector.load %arg2[%c12, %c0_68] : memref<16x32xf32, #tpu.memory_space<vmem>>, vector<1x32xf32>
    %c13 = arith.constant 13 : index
    %c0_69 = arith.constant 0 : index
    %187 = vector.load %arg2[%c13, %c0_69] : memref<16x32xf32, #tpu.memory_space<vmem>>, vector<1x32xf32>
    %c14 = arith.constant 14 : index
    %c0_70 = arith.constant 0 : index
    %188 = vector.load %arg2[%c14, %c0_70] : memref<16x32xf32, #tpu.memory_space<vmem>>, vector<1x32xf32>
    %c15 = arith.constant 15 : index
    %c0_71 = arith.constant 0 : index
    %189 = vector.load %arg2[%c15, %c0_71] : memref<16x32xf32, #tpu.memory_space<vmem>>, vector<1x32xf32>
    %c1 = arith.constant 1 : index
    %c0_72 = arith.constant 0 : index
    %c0_73 = arith.constant 0 : index
    %190 = vector.load %arg4[%c1, %c0_72, %c0_73] : memref<2x33x96xbf16, #tpu.memory_space<vmem>>, vector<1x32x96xbf16>
    %191 = vector.shape_cast %190 : vector<1x32x96xbf16> to vector<32x96xbf16>
    %c1_74 = arith.constant 1 : index
    %c32_75 = arith.constant 32 : index
    %c0_76 = arith.constant 0 : index
    %192 = vector.load %arg4[%c1_74, %c32_75, %c0_76] : memref<2x33x96xbf16, #tpu.memory_space<vmem>>, vector<1x1x96xbf16>
    %193 = vector.shape_cast %192 : vector<1x1x96xbf16> to vector<1x96xbf16>
    %194 = arith.extf %193 : vector<1x96xbf16> to vector<1x96xf32>
    %195 = arith.truncf %185 : vector<16x32xf32> to vector<16x32xbf16>
    %cst_77 = arith.constant dense<0.000000e+00> : vector<16x96xf32>
    %196 = tpu.matmul %195, %191, %cst_77 {dimension_numbers = #tpu.dot_dimension_numbers<[1], [0], [0], [1], [0, 0, 1, 1], [], []>} : vector<16x32xbf16>, vector<32x96xbf16>, vector<16x96xf32> -> vector<16x96xf32>
    %197 = vector.broadcast %194 : vector<1x96xf32> to vector<16x96xf32>
    %198 = arith.addf %196, %197 : vector<16x96xf32>
    %199 = vector.shape_cast %198 : vector<16x96xf32> to vector<2x8x96xf32>
    %200 = vector.extract_strided_slice %199 {offsets = [0, 0, 0], sizes = [2, 8, 32], strides = [1, 1, 1]} : vector<2x8x96xf32> to vector<2x8x32xf32>
    %201 = vector.extract_strided_slice %199 {offsets = [0, 0, 32], sizes = [2, 8, 32], strides = [1, 1, 1]} : vector<2x8x96xf32> to vector<2x8x32xf32>
    %202 = vector.extract_strided_slice %199 {offsets = [0, 0, 64], sizes = [2, 8, 32], strides = [1, 1, 1]} : vector<2x8x96xf32> to vector<2x8x32xf32>
    %203 = vector.extract_strided_slice %200 {offsets = [0, 0, 0], sizes = [2, 8, 8], strides = [1, 1, 1]} : vector<2x8x32xf32> to vector<2x8x8xf32>
    %204 = arith.truncf %203 : vector<2x8x8xf32> to vector<2x8x8xbf16>
    %205 = vector.extract_strided_slice %201 {offsets = [0, 0, 0], sizes = [2, 8, 8], strides = [1, 1, 1]} : vector<2x8x32xf32> to vector<2x8x8xf32>
    %206 = arith.truncf %205 : vector<2x8x8xf32> to vector<2x8x8xbf16>
    %207 = vector.extract_strided_slice %202 {offsets = [0, 0, 0], sizes = [2, 8, 8], strides = [1, 1, 1]} : vector<2x8x32xf32> to vector<2x8x8xf32>
    %208 = arith.truncf %207 : vector<2x8x8xf32> to vector<2x8x8xbf16>
    %cst_78 = arith.constant dense<0.000000e+00> : vector<2x8x8xf32>
    %209 = tpu.matmul %204, %206, %cst_78 {dimension_numbers = #tpu.dot_dimension_numbers<[2], [2], [1], [1], [0, 0, 0, 1, 1, 1], [0], [0]>} : vector<2x8x8xbf16>, vector<2x8x8xbf16>, vector<2x8x8xf32> -> vector<2x8x8xf32>
    %cst_79 = arith.constant 0.353553385 : f32
    %210 = vector.broadcast %cst_79 : f32 to vector<2x8x8xf32>
    %211 = arith.mulf %209, %210 : vector<2x8x8xf32>
    %cst_80 = arith.constant dense<0xFF800000> : vector<2x8xf32>
    %212 = vector.multi_reduction <maximumf>, %211, %cst_80 [2] : vector<2x8x8xf32> to vector<2x8xf32>
    %213 = vector.shape_cast %212 : vector<2x8xf32> to vector<2x8x1xf32>
    %214 = vector.broadcast %213 : vector<2x8x1xf32> to vector<2x8x8xf32>
    %215 = arith.subf %211, %214 : vector<2x8x8xf32>
    %216 = math.exp %215 : vector<2x8x8xf32>
    %cst_81 = arith.constant dense<0.000000e+00> : vector<2x8xf32>
    %217 = vector.multi_reduction <add>, %216, %cst_81 [2] : vector<2x8x8xf32> to vector<2x8xf32>
    %218 = vector.shape_cast %217 : vector<2x8xf32> to vector<2x8x1xf32>
    %219 = vector.broadcast %218 : vector<2x8x1xf32> to vector<2x8x8xf32>
    %220 = arith.divf %216, %219 : vector<2x8x8xf32>
    %221 = arith.truncf %220 : vector<2x8x8xf32> to vector<2x8x8xbf16>
    %cst_82 = arith.constant dense<0.000000e+00> : vector<2x8x8xf32>
    %222 = tpu.matmul %221, %208, %cst_82 {dimension_numbers = #tpu.dot_dimension_numbers<[2], [1], [1], [2], [0, 0, 0, 1, 1, 2], [0], [0]>} : vector<2x8x8xbf16>, vector<2x8x8xbf16>, vector<2x8x8xf32> -> vector<2x8x8xf32>
    %223 = vector.extract_strided_slice %200 {offsets = [0, 0, 8], sizes = [2, 8, 8], strides = [1, 1, 1]} : vector<2x8x32xf32> to vector<2x8x8xf32>
    %224 = arith.truncf %223 : vector<2x8x8xf32> to vector<2x8x8xbf16>
    %225 = vector.extract_strided_slice %201 {offsets = [0, 0, 8], sizes = [2, 8, 8], strides = [1, 1, 1]} : vector<2x8x32xf32> to vector<2x8x8xf32>
    %226 = arith.truncf %225 : vector<2x8x8xf32> to vector<2x8x8xbf16>
    %227 = vector.extract_strided_slice %202 {offsets = [0, 0, 8], sizes = [2, 8, 8], strides = [1, 1, 1]} : vector<2x8x32xf32> to vector<2x8x8xf32>
    %228 = arith.truncf %227 : vector<2x8x8xf32> to vector<2x8x8xbf16>
    %cst_83 = arith.constant dense<0.000000e+00> : vector<2x8x8xf32>
    %229 = tpu.matmul %224, %226, %cst_83 {dimension_numbers = #tpu.dot_dimension_numbers<[2], [2], [1], [1], [0, 0, 0, 1, 1, 1], [0], [0]>} : vector<2x8x8xbf16>, vector<2x8x8xbf16>, vector<2x8x8xf32> -> vector<2x8x8xf32>
    %cst_84 = arith.constant 0.353553385 : f32
    %230 = vector.broadcast %cst_84 : f32 to vector<2x8x8xf32>
    %231 = arith.mulf %229, %230 : vector<2x8x8xf32>
    %cst_85 = arith.constant dense<0xFF800000> : vector<2x8xf32>
    %232 = vector.multi_reduction <maximumf>, %231, %cst_85 [2] : vector<2x8x8xf32> to vector<2x8xf32>
    %233 = vector.shape_cast %232 : vector<2x8xf32> to vector<2x8x1xf32>
    %234 = vector.broadcast %233 : vector<2x8x1xf32> to vector<2x8x8xf32>
    %235 = arith.subf %231, %234 : vector<2x8x8xf32>
    %236 = math.exp %235 : vector<2x8x8xf32>
    %cst_86 = arith.constant dense<0.000000e+00> : vector<2x8xf32>
    %237 = vector.multi_reduction <add>, %236, %cst_86 [2] : vector<2x8x8xf32> to vector<2x8xf32>
    %238 = vector.shape_cast %237 : vector<2x8xf32> to vector<2x8x1xf32>
    %239 = vector.broadcast %238 : vector<2x8x1xf32> to vector<2x8x8xf32>
    %240 = arith.divf %236, %239 : vector<2x8x8xf32>
    %241 = arith.truncf %240 : vector<2x8x8xf32> to vector<2x8x8xbf16>
    %cst_87 = arith.constant dense<0.000000e+00> : vector<2x8x8xf32>
    %242 = tpu.matmul %241, %228, %cst_87 {dimension_numbers = #tpu.dot_dimension_numbers<[2], [1], [1], [2], [0, 0, 0, 1, 1, 2], [0], [0]>} : vector<2x8x8xbf16>, vector<2x8x8xbf16>, vector<2x8x8xf32> -> vector<2x8x8xf32>
    %243 = vector.extract_strided_slice %200 {offsets = [0, 0, 16], sizes = [2, 8, 8], strides = [1, 1, 1]} : vector<2x8x32xf32> to vector<2x8x8xf32>
    %244 = arith.truncf %243 : vector<2x8x8xf32> to vector<2x8x8xbf16>
    %245 = vector.extract_strided_slice %201 {offsets = [0, 0, 16], sizes = [2, 8, 8], strides = [1, 1, 1]} : vector<2x8x32xf32> to vector<2x8x8xf32>
    %246 = arith.truncf %245 : vector<2x8x8xf32> to vector<2x8x8xbf16>
    %247 = vector.extract_strided_slice %202 {offsets = [0, 0, 16], sizes = [2, 8, 8], strides = [1, 1, 1]} : vector<2x8x32xf32> to vector<2x8x8xf32>
    %248 = arith.truncf %247 : vector<2x8x8xf32> to vector<2x8x8xbf16>
    %cst_88 = arith.constant dense<0.000000e+00> : vector<2x8x8xf32>
    %249 = tpu.matmul %244, %246, %cst_88 {dimension_numbers = #tpu.dot_dimension_numbers<[2], [2], [1], [1], [0, 0, 0, 1, 1, 1], [0], [0]>} : vector<2x8x8xbf16>, vector<2x8x8xbf16>, vector<2x8x8xf32> -> vector<2x8x8xf32>
    %cst_89 = arith.constant 0.353553385 : f32
    %250 = vector.broadcast %cst_89 : f32 to vector<2x8x8xf32>
    %251 = arith.mulf %249, %250 : vector<2x8x8xf32>
    %cst_90 = arith.constant dense<0xFF800000> : vector<2x8xf32>
    %252 = vector.multi_reduction <maximumf>, %251, %cst_90 [2] : vector<2x8x8xf32> to vector<2x8xf32>
    %253 = vector.shape_cast %252 : vector<2x8xf32> to vector<2x8x1xf32>
    %254 = vector.broadcast %253 : vector<2x8x1xf32> to vector<2x8x8xf32>
    %255 = arith.subf %251, %254 : vector<2x8x8xf32>
    %256 = math.exp %255 : vector<2x8x8xf32>
    %cst_91 = arith.constant dense<0.000000e+00> : vector<2x8xf32>
    %257 = vector.multi_reduction <add>, %256, %cst_91 [2] : vector<2x8x8xf32> to vector<2x8xf32>
    %258 = vector.shape_cast %257 : vector<2x8xf32> to vector<2x8x1xf32>
    %259 = vector.broadcast %258 : vector<2x8x1xf32> to vector<2x8x8xf32>
    %260 = arith.divf %256, %259 : vector<2x8x8xf32>
    %261 = arith.truncf %260 : vector<2x8x8xf32> to vector<2x8x8xbf16>
    %cst_92 = arith.constant dense<0.000000e+00> : vector<2x8x8xf32>
    %262 = tpu.matmul %261, %248, %cst_92 {dimension_numbers = #tpu.dot_dimension_numbers<[2], [1], [1], [2], [0, 0, 0, 1, 1, 2], [0], [0]>} : vector<2x8x8xbf16>, vector<2x8x8xbf16>, vector<2x8x8xf32> -> vector<2x8x8xf32>
    %263 = vector.extract_strided_slice %200 {offsets = [0, 0, 24], sizes = [2, 8, 8], strides = [1, 1, 1]} : vector<2x8x32xf32> to vector<2x8x8xf32>
    %264 = arith.truncf %263 : vector<2x8x8xf32> to vector<2x8x8xbf16>
    %265 = vector.extract_strided_slice %201 {offsets = [0, 0, 24], sizes = [2, 8, 8], strides = [1, 1, 1]} : vector<2x8x32xf32> to vector<2x8x8xf32>
    %266 = arith.truncf %265 : vector<2x8x8xf32> to vector<2x8x8xbf16>
    %267 = vector.extract_strided_slice %202 {offsets = [0, 0, 24], sizes = [2, 8, 8], strides = [1, 1, 1]} : vector<2x8x32xf32> to vector<2x8x8xf32>
    %268 = arith.truncf %267 : vector<2x8x8xf32> to vector<2x8x8xbf16>
    %cst_93 = arith.constant dense<0.000000e+00> : vector<2x8x8xf32>
    %269 = tpu.matmul %264, %266, %cst_93 {dimension_numbers = #tpu.dot_dimension_numbers<[2], [2], [1], [1], [0, 0, 0, 1, 1, 1], [0], [0]>} : vector<2x8x8xbf16>, vector<2x8x8xbf16>, vector<2x8x8xf32> -> vector<2x8x8xf32>
    %cst_94 = arith.constant 0.353553385 : f32
    %270 = vector.broadcast %cst_94 : f32 to vector<2x8x8xf32>
    %271 = arith.mulf %269, %270 : vector<2x8x8xf32>
    %cst_95 = arith.constant dense<0xFF800000> : vector<2x8xf32>
    %272 = vector.multi_reduction <maximumf>, %271, %cst_95 [2] : vector<2x8x8xf32> to vector<2x8xf32>
    %273 = vector.shape_cast %272 : vector<2x8xf32> to vector<2x8x1xf32>
    %274 = vector.broadcast %273 : vector<2x8x1xf32> to vector<2x8x8xf32>
    %275 = arith.subf %271, %274 : vector<2x8x8xf32>
    %276 = math.exp %275 : vector<2x8x8xf32>
    %cst_96 = arith.constant dense<0.000000e+00> : vector<2x8xf32>
    %277 = vector.multi_reduction <add>, %276, %cst_96 [2] : vector<2x8x8xf32> to vector<2x8xf32>
    %278 = vector.shape_cast %277 : vector<2x8xf32> to vector<2x8x1xf32>
    %279 = vector.broadcast %278 : vector<2x8x1xf32> to vector<2x8x8xf32>
    %280 = arith.divf %276, %279 : vector<2x8x8xf32>
    %281 = arith.truncf %280 : vector<2x8x8xf32> to vector<2x8x8xbf16>
    %cst_97 = arith.constant dense<0.000000e+00> : vector<2x8x8xf32>
    %282 = tpu.matmul %281, %268, %cst_97 {dimension_numbers = #tpu.dot_dimension_numbers<[2], [1], [1], [2], [0, 0, 0, 1, 1, 2], [0], [0]>} : vector<2x8x8xbf16>, vector<2x8x8xbf16>, vector<2x8x8xf32> -> vector<2x8x8xf32>
    %283 = tpu.concatenate %222, %242, %262, %282 in 2 : vector<2x8x8xf32>, vector<2x8x8xf32>, vector<2x8x8xf32>, vector<2x8x8xf32> -> vector<2x8x32xf32>
    %284 = vector.shape_cast %283 : vector<2x8x32xf32> to vector<16x32xf32>
    %c1_98 = arith.constant 1 : index
    %c0_99 = arith.constant 0 : index
    %c0_100 = arith.constant 0 : index
    %285 = vector.load %arg5[%c1_98, %c0_99, %c0_100] : memref<2x33x32xbf16, #tpu.memory_space<vmem>>, vector<1x32x32xbf16>
    %286 = vector.shape_cast %285 : vector<1x32x32xbf16> to vector<32x32xbf16>
    %c1_101 = arith.constant 1 : index
    %c32_102 = arith.constant 32 : index
    %c0_103 = arith.constant 0 : index
    %287 = vector.load %arg5[%c1_101, %c32_102, %c0_103] : memref<2x33x32xbf16, #tpu.memory_space<vmem>>, vector<1x1x32xbf16>
    %288 = vector.shape_cast %287 : vector<1x1x32xbf16> to vector<1x32xbf16>
    %289 = arith.extf %288 : vector<1x32xbf16> to vector<1x32xf32>
    %290 = arith.truncf %284 : vector<16x32xf32> to vector<16x32xbf16>
    %cst_104 = arith.constant dense<0.000000e+00> : vector<16x32xf32>
    %291 = tpu.matmul %290, %286, %cst_104 {dimension_numbers = #tpu.dot_dimension_numbers<[1], [0], [0], [1], [0, 0, 1, 1], [], []>} : vector<16x32xbf16>, vector<32x32xbf16>, vector<16x32xf32> -> vector<16x32xf32>
    %292 = vector.broadcast %289 : vector<1x32xf32> to vector<16x32xf32>
    %293 = arith.addf %291, %292 : vector<16x32xf32>
    %294 = arith.addf %185, %293 : vector<16x32xf32>
    %cst_105 = arith.constant dense<0.000000e+00> : vector<16xf32>
    %295 = vector.multi_reduction <add>, %294, %cst_105 [1] : vector<16x32xf32> to vector<16xf32>
    %296 = vector.shape_cast %295 : vector<16xf32> to vector<16x1xf32>
    %cst_106 = arith.constant 3.200000e+01 : f32
    %297 = vector.broadcast %cst_106 : f32 to vector<16x1xf32>
    %298 = arith.divf %296, %297 : vector<16x1xf32>
    %299 = vector.broadcast %298 : vector<16x1xf32> to vector<16x32xf32>
    %300 = arith.subf %294, %299 : vector<16x32xf32>
    %301 = arith.mulf %300, %300 : vector<16x32xf32>
    %cst_107 = arith.constant dense<0.000000e+00> : vector<16xf32>
    %302 = vector.multi_reduction <add>, %301, %cst_107 [1] : vector<16x32xf32> to vector<16xf32>
    %303 = vector.shape_cast %302 : vector<16xf32> to vector<16x1xf32>
    %cst_108 = arith.constant 3.200000e+01 : f32
    %304 = vector.broadcast %cst_108 : f32 to vector<16x1xf32>
    %305 = arith.divf %303, %304 : vector<16x1xf32>
    %306 = vector.broadcast %298 : vector<16x1xf32> to vector<16x32xf32>
    %307 = arith.subf %294, %306 : vector<16x32xf32>
    %cst_109 = arith.constant 9.99999974E-6 : f32
    %308 = vector.broadcast %cst_109 : f32 to vector<16x1xf32>
    %309 = arith.addf %305, %308 : vector<16x1xf32>
    %310 = math.rsqrt %309 : vector<16x1xf32>
    %311 = vector.broadcast %310 : vector<16x1xf32> to vector<16x32xf32>
    %312 = arith.mulf %307, %311 : vector<16x32xf32>
    %313 = vector.broadcast %186 : vector<1x32xf32> to vector<16x32xf32>
    %314 = arith.mulf %312, %313 : vector<16x32xf32>
    %315 = vector.broadcast %187 : vector<1x32xf32> to vector<16x32xf32>
    %316 = arith.addf %314, %315 : vector<16x32xf32>
    %317 = vector.shape_cast %316 : vector<16x32xf32> to vector<2x8x32xf32>
    %318 = vector.extract_strided_slice %317 {offsets = [0, 7, 0], sizes = [2, 1, 32], strides = [1, 1, 1]} : vector<2x8x32xf32> to vector<2x1x32xf32>
    %319 = vector.shape_cast %318 : vector<2x1x32xf32> to vector<2x32xf32>
    %c1_110 = arith.constant 1 : index
    %c0_111 = arith.constant 0 : index
    %c0_112 = arith.constant 0 : index
    %320 = vector.load %arg6[%c1_110, %c0_111, %c0_112] : memref<2x33x64xbf16, #tpu.memory_space<vmem>>, vector<1x32x64xbf16>
    %321 = vector.shape_cast %320 : vector<1x32x64xbf16> to vector<32x64xbf16>
    %c1_113 = arith.constant 1 : index
    %c32_114 = arith.constant 32 : index
    %c0_115 = arith.constant 0 : index
    %322 = vector.load %arg6[%c1_113, %c32_114, %c0_115] : memref<2x33x64xbf16, #tpu.memory_space<vmem>>, vector<1x1x64xbf16>
    %323 = vector.shape_cast %322 : vector<1x1x64xbf16> to vector<1x64xbf16>
    %324 = arith.extf %323 : vector<1x64xbf16> to vector<1x64xf32>
    %325 = arith.truncf %319 : vector<2x32xf32> to vector<2x32xbf16>
    %cst_116 = arith.constant dense<0.000000e+00> : vector<2x64xf32>
    %326 = tpu.matmul %325, %321, %cst_116 {dimension_numbers = #tpu.dot_dimension_numbers<[1], [0], [0], [1], [0, 0, 1, 1], [], []>} : vector<2x32xbf16>, vector<32x64xbf16>, vector<2x64xf32> -> vector<2x64xf32>
    %327 = vector.broadcast %324 : vector<1x64xf32> to vector<2x64xf32>
    %328 = arith.addf %326, %327 : vector<2x64xf32>
    %cst_117 = arith.constant 0.000000e+00 : f32
    %329 = vector.broadcast %cst_117 : f32 to vector<2x64xf32>
    %330 = arith.maximumf %328, %329 : vector<2x64xf32>
    %c1_118 = arith.constant 1 : index
    %c0_119 = arith.constant 0 : index
    %c0_120 = arith.constant 0 : index
    %331 = vector.load %arg7[%c1_118, %c0_119, %c0_120] : memref<2x65x32xbf16, #tpu.memory_space<vmem>>, vector<1x64x32xbf16>
    %332 = vector.shape_cast %331 : vector<1x64x32xbf16> to vector<64x32xbf16>
    %c1_121 = arith.constant 1 : index
    %c64_122 = arith.constant 64 : index
    %c0_123 = arith.constant 0 : index
    %333 = vector.load %arg7[%c1_121, %c64_122, %c0_123] : memref<2x65x32xbf16, #tpu.memory_space<vmem>>, vector<1x1x32xbf16>
    %334 = vector.shape_cast %333 : vector<1x1x32xbf16> to vector<1x32xbf16>
    %335 = arith.extf %334 : vector<1x32xbf16> to vector<1x32xf32>
    %336 = arith.truncf %330 : vector<2x64xf32> to vector<2x64xbf16>
    %cst_124 = arith.constant dense<0.000000e+00> : vector<2x32xf32>
    %337 = tpu.matmul %336, %332, %cst_124 {dimension_numbers = #tpu.dot_dimension_numbers<[1], [0], [0], [1], [0, 0, 1, 1], [], []>} : vector<2x64xbf16>, vector<64x32xbf16>, vector<2x32xf32> -> vector<2x32xf32>
    %338 = vector.broadcast %335 : vector<1x32xf32> to vector<2x32xf32>
    %339 = arith.addf %337, %338 : vector<2x32xf32>
    %340 = arith.addf %319, %339 : vector<2x32xf32>
    %cst_125 = arith.constant dense<0.000000e+00> : vector<2xf32>
    %341 = vector.multi_reduction <add>, %340, %cst_125 [1] : vector<2x32xf32> to vector<2xf32>
    %342 = vector.shape_cast %341 : vector<2xf32> to vector<2x1xf32>
    %cst_126 = arith.constant 3.200000e+01 : f32
    %343 = vector.broadcast %cst_126 : f32 to vector<2x1xf32>
    %344 = arith.divf %342, %343 : vector<2x1xf32>
    %345 = vector.broadcast %344 : vector<2x1xf32> to vector<2x32xf32>
    %346 = arith.subf %340, %345 : vector<2x32xf32>
    %347 = arith.mulf %346, %346 : vector<2x32xf32>
    %cst_127 = arith.constant dense<0.000000e+00> : vector<2xf32>
    %348 = vector.multi_reduction <add>, %347, %cst_127 [1] : vector<2x32xf32> to vector<2xf32>
    %349 = vector.shape_cast %348 : vector<2xf32> to vector<2x1xf32>
    %cst_128 = arith.constant 3.200000e+01 : f32
    %350 = vector.broadcast %cst_128 : f32 to vector<2x1xf32>
    %351 = arith.divf %349, %350 : vector<2x1xf32>
    %352 = vector.broadcast %344 : vector<2x1xf32> to vector<2x32xf32>
    %353 = arith.subf %340, %352 : vector<2x32xf32>
    %cst_129 = arith.constant 9.99999974E-6 : f32
    %354 = vector.broadcast %cst_129 : f32 to vector<2x1xf32>
    %355 = arith.addf %351, %354 : vector<2x1xf32>
    %356 = math.rsqrt %355 : vector<2x1xf32>
    %357 = vector.broadcast %356 : vector<2x1xf32> to vector<2x32xf32>
    %358 = arith.mulf %353, %357 : vector<2x32xf32>
    %359 = vector.broadcast %188 : vector<1x32xf32> to vector<2x32xf32>
    %360 = arith.mulf %358, %359 : vector<2x32xf32>
    %361 = vector.broadcast %189 : vector<1x32xf32> to vector<2x32xf32>
    %362 = arith.addf %360, %361 : vector<2x32xf32>
    %363 = vector.shape_cast %362 : vector<2x32xf32> to vector<2x1x32xf32>
    %c0_130 = arith.constant 0 : index
    %c0_131 = arith.constant 0 : index
    %c0_132 = arith.constant 0 : index
    %364 = vector.load %arg8[%c0_130, %c0_131, %c0_132] : memref<2x1x32xf32, #tpu.memory_space<vmem>>, vector<2x1x32xf32>
    tpu.vector_store %arg8[%c0_130, %c0_131, %c0_132], %363 {strides = array<i32>} : memref<2x1x32xf32, #tpu.memory_space<vmem>>, vector<2x1x32xf32>,
    return
  }
  func.func @transform_0(%arg0: i32) -> (i32, i32, i32) {
    %c0_i32 = arith.constant 0 : i32
    %c0_i32_0 = arith.constant 0 : i32
    %c0_i32_1 = arith.constant 0 : i32
    return %arg0, %c0_i32, %c0_i32_0 : i32, i32, i32
  }
  func.func @transform_1(%arg0: i32) -> (i32, i32) {
    %c0_i32 = arith.constant 0 : i32
    %c0_i32_0 = arith.constant 0 : i32
    %c0_i32_1 = arith.constant 0 : i32
    return %c0_i32, %c0_i32_0 : i32, i32
  }
  func.func @transform_2(%arg0: i32) -> (i32, i32) {
    %c0_i32 = arith.constant 0 : i32
    %c0_i32_0 = arith.constant 0 : i32
    %c0_i32_1 = arith.constant 0 : i32
    return %c0_i32, %c0_i32_0 : i32, i32
  }
  func.func @transform_3(%arg0: i32) -> (i32, i32, i32) {
    %c0_i32 = arith.constant 0 : i32
    %c0_i32_0 = arith.constant 0 : i32
    %c0_i32_1 = arith.constant 0 : i32
    %c0_i32_2 = arith.constant 0 : i32
    return %c0_i32, %c0_i32_0, %c0_i32_1 : i32, i32, i32
  }
  func.func @transform_4(%arg0: i32) -> (i32, i32, i32) {
    %c0_i32 = arith.constant 0 : i32
    %c0_i32_0 = arith.constant 0 : i32
    %c0_i32_1 = arith.constant 0 : i32
    %c0_i32_2 = arith.constant 0 : i32
    return %c0_i32, %c0_i32_0, %c0_i32_1 : i32, i32, i32
  }
  func.func @transform_5(%arg0: i32) -> (i32, i32, i32) {
    %c0_i32 = arith.constant 0 : i32
    %c0_i32_0 = arith.constant 0 : i32
    %c0_i32_1 = arith.constant 0 : i32
    %c0_i32_2 = arith.constant 0 : i32
    return %c0_i32, %c0_i32_0, %c0_i32_1 : i32, i32, i32
  }
  func.func @transform_6(%arg0: i32) -> (i32, i32, i32) {
    %c0_i32 = arith.constant 0 : i32
    %c0_i32_0 = arith.constant 0 : i32
    %c0_i32_1 = arith.constant 0 : i32
    %c0_i32_2 = arith.constant 0 : i32
    return %c0_i32, %c0_i32_0, %c0_i32_1 : i32, i32, i32
  }
  func.func @transform_7(%arg0: i32) -> (i32, i32, i32) {
    %c0_i32 = arith.constant 0 : i32
    %c0_i32_0 = arith.constant 0 : i32
    %c0_i32_1 = arith.constant 0 : i32
    return %arg0, %c0_i32, %c0_i32_0 : i32, i32, i32
  }
}

</mosaic_0001>

<bundles_post_ra>
// kernel: tpu_custom_call.1
= control target key start
LH: loop header
LB: loop body
LE: loop exit
PB: predicated region body
PF: predicated region fallthrough
CT: control target
= control target key end

     0   :  { %vm43_vm0 = vcmask 1041408   ;;  %v3356_v2 = vmov 0.0   ;;  %vm3357_vm1 = vmmov 0   ;;  %vm39_vm2 = vcmask 31744   ;;  %s3973_s0 = inlined_call_operand.vmem [shape: f32[2,8,4], index: 0, kind: input, shape index: {}]   ;;  %s3974_s1 = inlined_call_operand.vmem [shape: f32[16,32], index: 1, kind: input, shape index: {}]   ;;  %s3975_s2 = inlined_call_operand.vmem [shape: bf16[5,32], index: 2, kind: input, shape index: {}]   ;;  %s3976_s3 = inlined_call_operand.vmem [shape: bf16[2,33,96], index: 3, kind: input, shape index: {}]   ;;  %s3977_s4 = inlined_call_operand.vmem [shape: bf16[2,33,32], index: 4, kind: input, shape index: {}]   ;;  %s3978_s5 = inlined_call_operand.vmem [shape: bf16[2,33,64], index: 5, kind: input, shape index: {}]   ;;  %s3979_s6 = inlined_call_operand.vmem [shape: bf16[2,65,32], index: 6, kind: input, shape index: {}]   ;;  %s3980_s7 = inlined_call_operand.hbm [shape: f32[2,1,32], index: 7, kind: output, shape index: {}]  }
   0x1   :  { %v32_v0 = vld [vmem:[%s3975_s2] sm:$0x3]  ;;  %2916 = vmatprep.subr.bf16.mxu0 %v3356_v2  ;;  %2918 = vmatprep.mubr.msk.bf16.mxu0 %vm3357_vm1, %v3356_v2  ;;  %v30_v4 = vld [vmem:[%s3973_s0 + $0x8] sm:$0xff] }
   0x2   :  { %v29_v1 = vld [vmem:[%s3973_s0] sm:$0xff]  ;;  %v45_v3 = vsel %vm43_vm0, %v32_v0, 0  ;;  %2936 = vmatprep.subr.bf16.mxu1 %v3356_v2  ;;  %2938 = vmatprep.mubr.msk.bf16.mxu1 %vm3357_vm1, %v3356_v2 }
   0x3   :  { %2917 = vmatpush3.bf16.msra.mxu0 %v45_v3  ;;  %v31_v5 = vpack.c.bf16 %v30_v4, %v29_v1 }
   0x4   :  { %2922 = vmatprep.subr.bf16.mxu0 %v3356_v2 }
   0x6   :  { %2919 = vmatmul.mubr.msk.bf16.vlgmr.msra.gmra.mxu0 %vm39_vm2, %v31_v5 }
   0x7   :  { %2926 = vmatprep.mubr.msk.bf16.mxu0 %vm3357_vm1, %v3356_v2 }
   0x8   :  { %12 = vsyncpa [#allocation3], 0  ;;  %v3234_v6 = vld [vmem:[%s3976_s3 + $0x8] sm:$0xff]   ;;  %v3235_v7 = vld [vmem:[%s3976_s3] sm:$0xff]   ;;  %v35_v8 = vlaneseq  ;;  %vm117_vm3 = vcmask 261120   ;;  %s3358_s15 = smov 96  }
   0x9   :  { %2923 = vmatpush3.bf16.msra.mxu0 %v3234_v6  ;;  %v33_v10 = vld [vmem:[%s3975_s2] sm:$0x4]  ;;  %v98_v24 = vld [vmem:[%s3976_s3 + $0x10] sm:$0x1]  ;;  %vm167_vm4 = vcmask 64512   ;;  %s3359_s16 = smov 64  }
   0xa   :  { %2924 = vmatprep.subr.bf16.mxu0 %v3356_v2  ;;  %v36_v9 = vshrl.u32 %v35_v8, 7  ;;  %v34_v11 = vunpack.c.l.bf16 %v33_v10  ;;  %v28_v17 = vld [vmem:[%s3974_s1] sm:$0xff]  ;;  %v99_v26 = vunpack.c.l.bf16 %v98_v24  ;;  %s3360_s17 = smov 88   ;;  %vm294_vm5 = vcmask 1043456   ;;  %s3361_s18 = smov 120  }
   0xb   :  { %s3362_s19 = smov 56   ;;  %s3363_s20 = smov 80   ;;  %vm1078_vm6 = vcmask 130048   ;;  %vm1081_vm7 = vcmask 195584   ;;  %vm1300_vm8 = vcmask 523264   ;;  %vm2502_vm9 = vcmask 1041409  }
   0xc   :  { %v37_v12 = vsub.s32 4, %v36_v9  ;;  %v3458_v25 = vsub.s32 0, %v36_v9  ;;  %s3364_s21 = smov 112   ;;  %s3365_s22 = smov 48   ;;  %vm2656_vm10 = vcmask 261127   ;;  %vm2660_vm11 = vcmask 253952  }
   0xd   :  { %2925 = vmatpush3.bf16.msra.mxu0 %v3235_v7  ;;  %s3366_s23 = smov 72   ;;  %s3367_s24 = smov 104  }
   0xe   :  { %2930 = vmatprep.subr.bf16.mxu0 %v3356_v2  ;;  %v38_v13 = vrot.slane %v34_v11, %v37_v12  ;;  %v104_v27 = vrot.slane %v99_v26, %v3458_v25  ;;  %s3368_s25 = smov 40   ;;  %s3369_s26 = smov 8  }
   0xf   :  { %s3370_s27 = smov 16   ;;  %s3371_s0 = smov 24  }
  0xc6   :  { %v81_v14 = vpop.f32.mrf.mxu0 }
  0xc7   :  { %v82_v16 = vadd.f32 %v81_v14, %v38_v13 }
  0xc8   :  { %v2920_v15 = vpop.f32.mrf.mxu0 }
  0xc9   :  { %v3446_v21 = vadd.f32 %v82_v16, %v28_v17 }
  0xca   :  { %v84_v18 = vpop.f32.mrf.mxu0 }
  0xcb   :  { %v85_v19 = vadd.f32 %v84_v18, %v38_v13 }
  0xcc   :  { %v2921_v20 = vpop.f32.mrf.mxu0 }
  0xcd   :  { %v3448_v22 = vadd.f32 %v85_v19, %v28_v17 }
  0xcf   :  { %v100_v23 = vpack.c.bf16 %v3448_v22, %v3446_v21 }
  0xd1   :  { %2927 = vmatmul.mubr.msk.bf16.vlgmr.msra.gmra.mxu0 %vm117_vm3, %v100_v23 }
  0xd2   :  { %2932 = vmatprep.mubr.msk.bf16.mxu0 %vm3357_vm1, %v3356_v2 }
 0x191   :  { %v155_v28 = vpop.f32.mrf.mxu0 }
 0x192   :  { %v156_v29 = vadd.f32 %v155_v28, %v104_v27 }
 0x193   :  { %v2928_v30 = vpop.f32.mrf.mxu0 }
 0x194   :  { %v3461_v31 = vpack.c.bf16 %v156_v29, %v156_v29 }
 0x195   :  { %v158_v32 = vpop.f32.mrf.mxu0 }
 0x196   :  { %v159_v33 = vadd.f32 %v158_v32, %v104_v27  ;;  %165 = vrot.lane.b32.xlu0 %v3461_v31, %s3358_s15 }
 0x197   :  { %v2929_v34 = vpop.f32.mrf.mxu0 }
 0x198   :  { %v3465_v35 = vpack.c.bf16 %v159_v33, %v159_v33 }
 0x19a   :  { %215 = vrot.lane.b32.xlu0 %v3465_v35, %s3358_s15 }
 0x208   :  { %v166_v36 = vpop.permute.xlu0 %165 }
 0x209   :  { %v172_v37 = vsel %vm167_vm4, %v166_v36, 0 }
 0x20a   :  { %2931 = vmatpush3.bf16.xpose.msra.mxu0 %v172_v37 }
 0x20b   :  { %2942 = vmatprep.subr.bf16.mxu0 %v3356_v2 }
 0x20c   :  { %v216_v38 = vpop.permute.xlu0 %215 }
 0x20d   :  { %v221_v39 = vsel %vm167_vm4, %v216_v38, 0 }
 0x20e   :  { %2937 = vmatpush3.bf16.xpose.msra.mxu1 %v221_v39 }
 0x20f   :  { %2948 = vmatprep.subr.bf16.mxu1 %v3356_v2 }
 0x211   :  { %2933 = vmatmul.mubr.msk.bf16.vlgmr.msra.gmra.mxu0 %vm167_vm4, %v3461_v31 }
 0x212   :  { %2944 = vmatprep.mubr.msk.bf16.mxu0 %vm3357_vm1, %v3356_v2 }
 0x215   :  { %2939 = vmatmul.mubr.msk.bf16.vlgmr.msra.gmra.mxu1 %vm167_vm4, %v3465_v35 }
 0x216   :  { %2950 = vmatprep.mubr.msk.bf16.mxu1 %vm3357_vm1, %v3356_v2 }
 0x2d1   :  { %v208_v40 = vpop.f32.mrf.mxu0 }
 0x2d2   :  { %v263_v41 = vmul.f32 0.35355338, %v208_v40 }
 0x2d3   :  { %v2934_v42 = vpop.f32.mrf.mxu0 }
 0x2d4   :  { %v265_v43 = vsel %vm167_vm4, %v263_v41, -inf }
 0x2d5   :  { %v257_v44 = vpop.f32.mrf.mxu1  ;;  %266 = vmax.xlane.f32.xlu1 %v265_v43  ;;  %v211_v45 = vpop.f32.mrf.mxu0 }
 0x2d6   :  { %v264_v46 = vmul.f32 0.35355338, %v257_v44 }
 0x2d7   :  { %v2935_v47 = vpop.f32.mrf.mxu0  ;;  %v2940_v48 = vpop.f32.mrf.mxu1 }
 0x2d8   :  { %v268_v49 = vsel %vm167_vm4, %v264_v46, -inf }
 0x2d9   :  { %v260_v50 = vpop.f32.mrf.mxu1  ;;  %269 = vmax.xlane.f32.xlu1 %v268_v49 }
 0x2db   :  { %v2941_v51 = vpop.f32.mrf.mxu1 }
 0x2ea   :  { %289 = vrot.lane.b32.xlu1 %v3461_v31, %s3359_s16 }
 0x2ee   :  { %338 = vrot.lane.b32.xlu1 %v3465_v35, %s3359_s16 }
 0x2f2   :  { %388 = vrot.lane.b32.xlu1 %v3461_v31, %s3360_s17 }
 0x35e   :  { %v267_v52 = vpop.xlane.xlu1 %266 }
 0x35f   :  { %v271_v53 = vsub.f32 %v263_v41, %v267_v52 }
 0x361   :  { %v273_v54 = vmul.f32 1.442695, %v271_v53 }
 0x362   :  { %v270_v55 = vpop.xlane.xlu1 %269 }
 0x363   :  { %3254 = vpow2.f32 %v273_v54  ;;  %v272_v56 = vsub.f32 %v264_v46, %v270_v55 }
 0x365   :  { %v275_v57 = vmul.f32 1.442695, %v272_v56 }
 0x366   :  { %v290_v58 = vpop.permute.xlu1 %289 }
 0x367   :  { %3256 = vpow2.f32 %v275_v57  ;;  %v296_v59 = vsel %vm294_vm5, %v290_v58, 0 }
 0x368   :  { %2943 = vmatpush3.bf16.msra.mxu0 %v296_v59 }
 0x369   :  { %2954 = vmatprep.subr.bf16.mxu0 %v3356_v2 }
 0x36a   :  { %v339_v60 = vpop.permute.xlu1 %338 }
 0x36b   :  { %v344_v61 = vsel %vm294_vm5, %v339_v60, 0 }
 0x36c   :  { %2949 = vmatpush3.bf16.msra.mxu1 %v344_v61 }
 0x36d   :  { %2960 = vmatprep.subr.bf16.mxu1 %v3356_v2 }
 0x36e   :  { %v389_v3 = vpop.permute.xlu1 %388 }
 0x36f   :  { %v394_v10 = vsel %vm167_vm4, %v389_v3, 0 }
 0x370   :  { %v3255_v62 = vpop.eup %3254 }
 0x371   :  { %v277_v63 = vsel %vm167_vm4, %v3255_v62, 0.0 }
 0x372   :  { %278 = vadd.xlane.f32.xlu0 %v277_v63 }
 0x374   :  { %v3257_v0 = vpop.eup %3256 }
 0x375   :  { %v280_v1 = vsel %vm167_vm4, %v3257_v0, 0.0 }
 0x376   :  { %281 = vadd.xlane.f32.xlu1 %v280_v1 }
 0x387   :  { %438 = vrot.lane.b32.xlu1 %v3465_v35, %s3360_s17 }
 0x388   :  { %386 = vrot.lane.b32.xlu0 %v3461_v31, %s3361_s18 }
 0x38b   :  { %436 = vrot.lane.b32.xlu1 %v3465_v35, %s3361_s18 }
 0x3fb   :  { %v279_v4 = vpop.xlane.xlu0 %278 }
 0x3fc   :  { %3258 = vrcp.f32 %v279_v4 }
 0x3ff   :  { %v282_v5 = vpop.xlane.xlu1 %281  ;;  %v387_v15 = vpop.permute.xlu0 %386 }
 0x400   :  { %3260 = vrcp.f32 %v282_v5 }
 0x403   :  { %v439_v12 = vpop.permute.xlu1 %438 }
 0x404   :  { %v444_v14 = vsel %vm167_vm4, %v439_v12, 0 }
 0x407   :  { %v437_v16 = vpop.permute.xlu1 %436 }
 0x409   :  { %v3259_v6 = vpop.eup %3258 }
 0x40a   :  { %v284_v7 = vmul.f32 %v3259_v6, %v3255_v62 }
 0x40c   :  { %v287_v8 = vpack.c.bf16 %v284_v7, %v284_v7 }
 0x40d   :  { %v3261_v9 = vpop.eup %3260 }
 0x40e   :  { %2945 = vmatmul.mubr.msk.bf16.vlgmr.msra.gmra.mxu0 %vm167_vm4, %v287_v8  ;;  %v286_v11 = vmul.f32 %v3261_v9, %v3257_v0 }
 0x40f   :  { %2955 = vmatpush3.bf16.xpose.msra.mxu0 %v394_v10  ;;  %2956 = vmatprep.mubr.msk.bf16.mxu0 %vm3357_vm1, %v3356_v2 }
 0x410   :  { %v288_v13 = vpack.c.bf16 %v286_v11, %v286_v11  ;;  %2966 = vmatprep.subr.bf16.mxu0 %v3356_v2 }
 0x412   :  { %2951 = vmatmul.mubr.msk.bf16.vlgmr.msra.gmra.mxu1 %vm167_vm4, %v288_v13 }
 0x413   :  { %2961 = vmatpush3.bf16.xpose.msra.mxu1 %v444_v14  ;;  %2962 = vmatprep.mubr.msk.bf16.mxu1 %vm3357_vm1, %v3356_v2 }
 0x414   :  { %2972 = vmatprep.subr.bf16.mxu1 %v3356_v2 }
 0x416   :  { %2957 = vmatmul.mubr.msk.bf16.vlgmr.msra.gmra.mxu0 %vm167_vm4, %v387_v15 }
 0x417   :  { %2968 = vmatprep.mubr.msk.bf16.mxu0 %vm3357_vm1, %v3356_v2 }
 0x41a   :  { %2963 = vmatmul.mubr.msk.bf16.vlgmr.msra.gmra.mxu1 %vm167_vm4, %v437_v16 }
 0x41b   :  { %2974 = vmatprep.mubr.msk.bf16.mxu1 %vm3357_vm1, %v3356_v2 }
 0x4ce   :  { %v3517_v17 = vpop.f32.mrf.mxu0 }
 0x4d0   :  { %v2946_v18 = vpop.f32.mrf.mxu0 }
 0x4d2   :  { %v335_v19 = vpop.f32.mrf.mxu0  ;;  %v3519_v20 = vpop.f32.mrf.mxu1 }
 0x4d4   :  { %v2947_v23 = vpop.f32.mrf.mxu0  ;;  %v2952_v24 = vpop.f32.mrf.mxu1 }
 0x4d6   :  { %v383_v26 = vpop.f32.mrf.mxu1  ;;  %v430_v27 = vpop.f32.mrf.mxu0 }
 0x4d7   :  { %v486_v28 = vmul.f32 0.35355338, %v430_v27 }
 0x4d8   :  { %v2953_v29 = vpop.f32.mrf.mxu1  ;;  %v2958_v30 = vpop.f32.mrf.mxu0 }
 0x4d9   :  { %v488_v32 = vsel %vm167_vm4, %v486_v28, -inf }
 0x4da   :  { %v480_v33 = vpop.f32.mrf.mxu1  ;;  %489 = vmax.xlane.f32.xlu1 %v488_v32  ;;  %v433_v34 = vpop.f32.mrf.mxu0 }
 0x4db   :  { %v487_v36 = vmul.f32 0.35355338, %v480_v33 }
 0x4dc   :  { %v2959_v37 = vpop.f32.mrf.mxu0  ;;  %v2964_v38 = vpop.f32.mrf.mxu1 }
 0x4dd   :  { %v491_v39 = vsel %vm167_vm4, %v487_v36, -inf }
 0x4de   :  { %492 = vmax.xlane.f32.xlu0 %v491_v39  ;;  %v483_v40 = vpop.f32.mrf.mxu1 }
 0x4e0   :  { %v2965_v41 = vpop.f32.mrf.mxu1 }
 0x4eb   :  { %512 = vrot.lane.b32.xlu1 %v3461_v31, %s3362_s19 }
 0x4ef   :  { %610 = vrot.lane.b32.xlu1 %v3461_v31, %s3363_s20 }
 0x4f4   :  { %560 = vrot.lane.b32.xlu0 %v3465_v35, %s3362_s19 }
 0x4f8   :  { %608 = vrot.lane.b32.xlu0 %v3461_v31, %s3364_s21 }
 0x563   :  { %v490_v42 = vpop.xlane.xlu1 %489 }
 0x564   :  { %v494_v43 = vsub.f32 %v486_v28, %v490_v42 }
 0x566   :  { %v496_v44 = vmul.f32 1.442695, %v494_v43 }
 0x567   :  { %v493_v45 = vpop.xlane.xlu0 %492  ;;  %v513_v46 = vpop.permute.xlu1 %512 }
 0x568   :  { %3262 = vpow2.f32 %v496_v44  ;;  %v495_v47 = vsub.f32 %v487_v36, %v493_v45  ;;  %v518_v48 = vsel %vm294_vm5, %v513_v46, 0 }
 0x569   :  { %2967 = vmatpush3.bf16.msra.mxu0 %v518_v48 }
 0x56a   :  { %v498_v49 = vmul.f32 1.442695, %v495_v47  ;;  %2978 = vmatprep.subr.bf16.mxu0 %v3356_v2 }
 0x56b   :  { %v561_v50 = vpop.permute.xlu0 %560  ;;  %v611_v56 = vpop.permute.xlu1 %610 }
 0x56c   :  { %3264 = vpow2.f32 %v498_v49  ;;  %v566_v51 = vsel %vm294_vm5, %v561_v50, 0  ;;  %v616_v63 = vsel %vm167_vm4, %v611_v56, 0 }
 0x56d   :  { %2973 = vmatpush3.bf16.msra.mxu1 %v566_v51 }
 0x56e   :  { %2984 = vmatprep.subr.bf16.mxu1 %v3356_v2 }
 0x56f   :  { %v609_v5 = vpop.permute.xlu0 %608 }
 0x575   :  { %v3263_v52 = vpop.eup %3262 }
 0x576   :  { %v500_v53 = vsel %vm167_vm4, %v3263_v52, 0.0 }
 0x577   :  { %501 = vadd.xlane.f32.xlu1 %v500_v53 }
 0x579   :  { %v3265_v54 = vpop.eup %3264 }
 0x57a   :  { %v503_v55 = vsel %vm167_vm4, %v3265_v54, 0.0 }
 0x57b   :  { %504 = vadd.xlane.f32.xlu1 %v503_v55 }
 0x58c   :  { %660 = vrot.lane.b32.xlu1 %v3465_v35, %s3363_s20 }
 0x590   :  { %658 = vrot.lane.b32.xlu1 %v3465_v35, %s3364_s21 }
 0x600   :  { %v502_v57 = vpop.xlane.xlu1 %501 }
 0x601   :  { %3266 = vrcp.f32 %v502_v57 }
 0x604   :  { %v505_v58 = vpop.xlane.xlu1 %504 }
 0x605   :  { %3268 = vrcp.f32 %v505_v58 }
 0x608   :  { %v661_v1 = vpop.permute.xlu1 %660 }
 0x609   :  { %v666_v4 = vsel %vm167_vm4, %v661_v1, 0 }
 0x60c   :  { %v659_v6 = vpop.permute.xlu1 %658 }
 0x60e   :  { %v3267_v59 = vpop.eup %3266 }
 0x60f   :  { %v507_v60 = vmul.f32 %v3267_v59, %v3263_v52 }
 0x611   :  { %v510_v61 = vpack.c.bf16 %v507_v60, %v507_v60 }
 0x612   :  { %v3269_v62 = vpop.eup %3268 }
 0x613   :  { %2969 = vmatmul.mubr.msk.bf16.vlgmr.msra.gmra.mxu0 %vm167_vm4, %v510_v61  ;;  %v509_v0 = vmul.f32 %v3269_v62, %v3265_v54 }
 0x614   :  { %2979 = vmatpush3.bf16.xpose.msra.mxu0 %v616_v63  ;;  %2980 = vmatprep.mubr.msk.bf16.mxu0 %vm3357_vm1, %v3356_v2 }
 0x615   :  { %v511_v3 = vpack.c.bf16 %v509_v0, %v509_v0  ;;  %2990 = vmatprep.subr.bf16.mxu0 %v3356_v2 }
 0x617   :  { %2975 = vmatmul.mubr.msk.bf16.vlgmr.msra.gmra.mxu1 %vm167_vm4, %v511_v3 }
 0x618   :  { %2985 = vmatpush3.bf16.xpose.msra.mxu1 %v666_v4  ;;  %2986 = vmatprep.mubr.msk.bf16.mxu1 %vm3357_vm1, %v3356_v2 }
 0x619   :  { %2996 = vmatprep.subr.bf16.mxu1 %v3356_v2 }
 0x61b   :  { %2981 = vmatmul.mubr.msk.bf16.vlgmr.msra.gmra.mxu0 %vm167_vm4, %v609_v5 }
 0x61c   :  { %2992 = vmatprep.mubr.msk.bf16.mxu0 %vm3357_vm1, %v3356_v2 }
 0x61f   :  { %2987 = vmatmul.mubr.msk.bf16.vlgmr.msra.gmra.mxu1 %vm167_vm4, %v659_v6 }
 0x620   :  { %2998 = vmatprep.mubr.msk.bf16.mxu1 %vm3357_vm1, %v3356_v2 }
 0x6d3   :  { %v3557_v7 = vpop.f32.mrf.mxu0 }
 0x6d5   :  { %v2970_v8 = vpop.f32.mrf.mxu0 }
 0x6d7   :  { %v557_v9 = vpop.f32.mrf.mxu0  ;;  %v3559_v10 = vpop.f32.mrf.mxu1 }
 0x6d8   :  { %v3204_v11 = vpack.i.bf16 %v3559_v10, %v3557_v7 }
 0x6d9   :  { %v2971_v12 = vpop.f32.mrf.mxu0  ;;  %v2976_v13 = vpop.f32.mrf.mxu1 }
 0x6db   :  { %v605_v14 = vpop.f32.mrf.mxu1  ;;  %v652_v15 = vpop.f32.mrf.mxu0 }
 0x6dc   :  { %v708_v16 = vmul.f32 0.35355338, %v652_v15 }
 0x6dd   :  { %v2977_v18 = vpop.f32.mrf.mxu1  ;;  %v2982_v19 = vpop.f32.mrf.mxu0 }
 0x6de   :  { %v710_v23 = vsel %vm167_vm4, %v708_v16, -inf }
 0x6df   :  { %v702_v24 = vpop.f32.mrf.mxu1  ;;  %711 = vmax.xlane.f32.xlu0 %v710_v23  ;;  %v655_v26 = vpop.f32.mrf.mxu0 }
 0x6e0   :  { %v709_v27 = vmul.f32 0.35355338, %v702_v24 }
 0x6e1   :  { %v2983_v28 = vpop.f32.mrf.mxu0  ;;  %v2988_v29 = vpop.f32.mrf.mxu1 }
 0x6e2   :  { %v713_v30 = vsel %vm167_vm4, %v709_v27, -inf }
 0x6e3   :  { %714 = vmax.xlane.f32.xlu1 %v713_v30  ;;  %v705_v32 = vpop.f32.mrf.mxu1 }
 0x6e5   :  { %v2989_v33 = vpop.f32.mrf.mxu1 }
 0x6f4   :  { %734 = vrot.lane.b32.xlu1 %v3461_v31, %s3365_s22 }
 0x6f8   :  { %832 = vrot.lane.b32.xlu1 %v3461_v31, %s3366_s23 }
 0x6fc   :  { %882 = vrot.lane.b32.xlu1 %v3465_v35, %s3366_s23 }
 0x700   :  { %880 = vrot.lane.b32.xlu1 %v3465_v35, %s3367_s24 }
 0x768   :  { %v712_v34 = vpop.xlane.xlu0 %711 }
 0x769   :  { %v716_v36 = vsub.f32 %v708_v16, %v712_v34 }
 0x76b   :  { %v718_v37 = vmul.f32 1.442695, %v716_v36 }
 0x76c   :  { %v715_v38 = vpop.xlane.xlu1 %714 }
 0x76d   :  { %3270 = vpow2.f32 %v718_v37  ;;  %v717_v39 = vsub.f32 %v709_v27, %v715_v38 }
 0x76f   :  { %v720_v40 = vmul.f32 1.442695, %v717_v39 }
 0x770   :  { %v735_v41 = vpop.permute.xlu1 %734 }
 0x771   :  { %3272 = vpow2.f32 %v720_v40  ;;  %v740_v42 = vsel %vm294_vm5, %v735_v41, 0 }
 0x772   :  { %2991 = vmatpush3.bf16.msra.mxu0 %v740_v42 }
 0x773   :  { %3002 = vmatprep.subr.bf16.mxu0 %v3356_v2 }
 0x774   :  { %v833_v52 = vpop.permute.xlu1 %832 }
 0x775   :  { %v838_v56 = vsel %vm167_vm4, %v833_v52, 0 }
 0x778   :  { %v883_v58 = vpop.permute.xlu1 %882 }
 0x779   :  { %v888_v60 = vsel %vm167_vm4, %v883_v58, 0 }
 0x77a   :  { %v3271_v43 = vpop.eup %3270 }
 0x77b   :  { %v722_v44 = vsel %vm167_vm4, %v3271_v43, 0.0 }
 0x77c   :  { %723 = vadd.xlane.f32.xlu0 %v722_v44  ;;  %v881_v62 = vpop.permute.xlu1 %880 }
 0x77e   :  { %v3273_v45 = vpop.eup %3272 }
 0x77f   :  { %v725_v46 = vsel %vm167_vm4, %v3273_v45, 0.0 }
 0x780   :  { %726 = vadd.xlane.f32.xlu0 %v725_v46 }
 0x796   :  { %782 = vrot.lane.b32.xlu0 %v3465_v35, %s3365_s22 }
 0x79a   :  { %830 = vrot.lane.b32.xlu0 %v3461_v31, %s3367_s24 }
 0x805   :  { %v724_v47 = vpop.xlane.xlu0 %723 }
 0x806   :  { %3274 = vrcp.f32 %v724_v47 }
 0x809   :  { %v727_v48 = vpop.xlane.xlu0 %726 }
 0x80a   :  { %3276 = vrcp.f32 %v727_v48  ;;  %v3236_v48 = vld [vmem:[%s3977_s4 + $0x8] sm:$0xff]  }
 0x80d   :  { %v783_v49 = vpop.permute.xlu0 %782 }
 0x80e   :  { %v788_v50 = vsel %vm294_vm5, %v783_v49, 0  ;;  %v3237_v49 = vld [vmem:[%s3977_s4] sm:$0xff]  }
 0x80f   :  { %2997 = vmatpush3.bf16.msra.mxu1 %v788_v50 }
 0x810   :  { %3008 = vmatprep.subr.bf16.mxu1 %v3356_v2 }
 0x811   :  { %v831_v61 = vpop.permute.xlu0 %830 }
 0x813   :  { %v3275_v51 = vpop.eup %3274 }
 0x814   :  { %v729_v53 = vmul.f32 %v3275_v51, %v3271_v43 }
 0x816   :  { %v732_v54 = vpack.c.bf16 %v729_v53, %v729_v53 }
 0x817   :  { %v3277_v55 = vpop.eup %3276 }
 0x818   :  { %2993 = vmatmul.mubr.msk.bf16.vlgmr.msra.gmra.mxu0 %vm167_vm4, %v732_v54  ;;  %v731_v57 = vmul.f32 %v3277_v55, %v3273_v45 }
 0x819   :  { %3003 = vmatpush3.bf16.xpose.msra.mxu0 %v838_v56  ;;  %3004 = vmatprep.mubr.msk.bf16.mxu0 %vm3357_vm1, %v3356_v2 }
 0x81a   :  { %v733_v59 = vpack.c.bf16 %v731_v57, %v731_v57  ;;  %3014 = vmatprep.subr.bf16.mxu0 %v3356_v2 }
 0x81c   :  { %2999 = vmatmul.mubr.msk.bf16.vlgmr.msra.gmra.mxu1 %vm167_vm4, %v733_v59 }
 0x81d   :  { %3009 = vmatpush3.bf16.xpose.msra.mxu1 %v888_v60  ;;  %3010 = vmatprep.mubr.msk.bf16.mxu1 %vm3357_vm1, %v3356_v2 }
 0x81e   :  { %3020 = vmatprep.subr.bf16.mxu1 %v3356_v2 }
 0x820   :  { %3005 = vmatmul.mubr.msk.bf16.vlgmr.msra.gmra.mxu0 %vm167_vm4, %v831_v61 }
 0x821   :  { %3016 = vmatprep.mubr.msk.bf16.mxu0 %vm3357_vm1, %v3356_v2 }
 0x824   :  { %3011 = vmatmul.mubr.msk.bf16.vlgmr.msra.gmra.mxu1 %vm167_vm4, %v881_v62 }
 0x825   :  { %3022 = vmatprep.mubr.msk.bf16.mxu1 %vm3357_vm1, %v3356_v2 }
 0x8d8   :  { %v776_v63 = vpop.f32.mrf.mxu0 }
 0x8da   :  { %v2994_v0 = vpop.f32.mrf.mxu0 }
 0x8dc   :  { %v779_v1 = vpop.f32.mrf.mxu0  ;;  %v824_v3 = vpop.f32.mrf.mxu1 }
 0x8dd   :  { %v3209_v28 = vpack.i.bf16 %v824_v3, %v776_v63 }
 0x8de   :  { %v2995_v4 = vpop.f32.mrf.mxu0  ;;  %v3000_v5 = vpop.f32.mrf.mxu1 }
 0x8e0   :  { %v827_v6 = vpop.f32.mrf.mxu1  ;;  %v874_v8 = vpop.f32.mrf.mxu0 }
 0x8e1   :  { %v930_v9 = vmul.f32 0.35355338, %v874_v8 }
 0x8e2   :  { %v3001_v12 = vpop.f32.mrf.mxu1  ;;  %v3006_v13 = vpop.f32.mrf.mxu0 }
 0x8e3   :  { %v932_v14 = vsel %vm167_vm4, %v930_v9, -inf }
 0x8e4   :  { %v924_v15 = vpop.f32.mrf.mxu1  ;;  %933 = vmax.xlane.f32.xlu0 %v932_v14  ;;  %v877_v16 = vpop.f32.mrf.mxu0 }
 0x8e5   :  { %v931_v18 = vmul.f32 0.35355338, %v924_v15 }
 0x8e6   :  { %v3007_v19 = vpop.f32.mrf.mxu0  ;;  %v3012_v23 = vpop.f32.mrf.mxu1 }
 0x8e7   :  { %v935_v24 = vsel %vm167_vm4, %v931_v18, -inf }
 0x8e8   :  { %936 = vmax.xlane.f32.xlu1 %v935_v24  ;;  %v927_v26 = vpop.f32.mrf.mxu1 }
 0x8ea   :  { %v3013_v27 = vpop.f32.mrf.mxu1 }
 0x8f9   :  { %956 = vrot.lane.b32.xlu1 %v3461_v31, %s3368_s25 }
 0x8fd   :  { %3205 = vrot.lane.b32.xlu1 %v3204_v11, %s3369_s26 }
 0x901   :  { %3210 = vrot.lane.b32.xlu1 %v3209_v28, %s3370_s27 }
 0x96d   :  { %v934_v29 = vpop.xlane.xlu0 %933 }
 0x96e   :  { %v938_v30 = vsub.f32 %v930_v9, %v934_v29 }
 0x970   :  { %v940_v32 = vmul.f32 1.442695, %v938_v30 }
 0x971   :  { %v937_v33 = vpop.xlane.xlu1 %936 }
 0x972   :  { %3278 = vpow2.f32 %v940_v32  ;;  %v939_v34 = vsub.f32 %v931_v18, %v937_v33 }
 0x974   :  { %v942_v36 = vmul.f32 1.442695, %v939_v34 }
 0x975   :  { %v957_v37 = vpop.permute.xlu1 %956 }
 0x976   :  { %3280 = vpow2.f32 %v942_v36  ;;  %v962_v31 = vsel %vm294_vm5, %v957_v37, 0 }
 0x977   :  { %3015 = vmatpush3.bf16.msra.mxu0 %v962_v31 }
 0x978   :  { %3026 = vmatprep.subr.bf16.mxu0 %v3356_v2 }
 0x979   :  { %v3206_v59 = vpop.permute.xlu1 %3205 }
 0x97a   :  { %v3208_v61 = vunpack.i.h.bf16 %v3206_v59  ;;  %v3207_v62 = vunpack.i.l.bf16 %v3206_v59  ;;  %v1196_v59 = vld [vmem:[%s3978_s5 + $0x10] sm:$0x1] }
 0x97c   :  { %v1077_v3 = vsel %vm167_vm4, %v3519_v20, %v3208_v61  ;;  %v1076_v4 = vsel %vm167_vm4, %v3517_v17, %v3207_v62  ;;  %v1088_v17 = vld [vmem:[%s3977_s4 + $0x10] sm:$0x1] }
 0x97d   :  { %v3211_v60 = vpop.permute.xlu1 %3210  ;;  %v1089_v20 = vunpack.c.l.bf16 %v1088_v17 }
 0x97e   :  { %v3213_v63 = vunpack.i.h.bf16 %v3211_v60  ;;  %v3212_v0 = vunpack.i.l.bf16 %v3211_v60  ;;  %v1197_v60 = vunpack.c.l.bf16 %v1196_v59 }
 0x97f   :  { %v3279_v7 = vpop.eup %3278  ;;  %v1094_v15 = vrot.slane %v1089_v20, %v3458_v25 }
 0x980   :  { %v944_v10 = vsel %vm167_vm4, %v3279_v7, 0.0  ;;  %v1080_v8 = vsel %vm1078_vm6, %v1077_v3, %v3213_v63  ;;  %v1079_v9 = vsel %vm1078_vm6, %v1076_v4, %v3212_v0  ;;  %v1202_v61 = vrot.slane %v1197_v60, %v3458_v25 }
 0x981   :  { %945 = vadd.xlane.f32.xlu0 %v944_v10 }
 0x983   :  { %v3281_v11 = vpop.eup %3280 }
 0x984   :  { %v947_v38 = vsel %vm167_vm4, %v3281_v11, 0.0 }
 0x985   :  { %948 = vadd.xlane.f32.xlu0 %v947_v38  ;;  %v3239_v38 = vld [vmem:[%s3978_s5] sm:$0xff]  }
 0x99b   :  { %1004 = vrot.lane.b32.xlu0 %v3465_v35, %s3368_s25 }
 0xa0a   :  { %v946_v39 = vpop.xlane.xlu0 %945 }
 0xa0b   :  { %3282 = vrcp.f32 %v946_v39  ;;  %v3240_v39 = vld [vmem:[%s3979_s6 + $0x18] sm:$0xff]  }
 0xa0e   :  { %v949_v40 = vpop.xlane.xlu0 %948 }
 0xa0f   :  { %3284 = vrcp.f32 %v949_v40 }
 0xa12   :  { %v1005_v41 = vpop.permute.xlu0 %1004 }
 0xa13   :  { %v1010_v42 = vsel %vm294_vm5, %v1005_v41, 0 }
 0xa14   :  { %3021 = vmatpush3.bf16.msra.mxu1 %v1010_v42 }
 0xa15   :  { %3034 = vmatprep.subr.bf16.mxu1 %v3356_v2 }
 0xa18   :  { %v3283_v43 = vpop.eup %3282 }
 0xa19   :  { %v951_v44 = vmul.f32 %v3283_v43, %v3279_v7 }
 0xa1b   :  { %v954_v45 = vpack.c.bf16 %v951_v44, %v951_v44 }
 0xa1c   :  { %v3285_v46 = vpop.eup %3284 }
 0xa1d   :  { %3017 = vmatmul.mubr.msk.bf16.vlgmr.msra.gmra.mxu0 %vm167_vm4, %v954_v45  ;;  %v953_v47 = vmul.f32 %v3285_v46, %v3281_v11 }
 0xa1e   :  { %3030 = vmatprep.mubr.msk.bf16.mxu0 %vm3357_vm1, %v3356_v2  ;;  %3027 = vmatpush3.bf16.msra.mxu0 %v3236_v48 }
 0xa1f   :  { %v955_v35 = vpack.c.bf16 %v953_v47, %v953_v47  ;;  %3028 = vmatprep.subr.bf16.mxu0 %v3356_v2 }
 0xa21   :  { %3023 = vmatmul.mubr.msk.bf16.vlgmr.msra.gmra.mxu1 %vm167_vm4, %v955_v35  ;;  %v2752_v35 = vld [vmem:[%s3974_s1 + $0x8] ss:$0 sm:$0xff] }
 0xa22   :  { %3038 = vmatprep.mubr.msk.bf16.mxu1 %vm3357_vm1, %v3356_v2  ;;  %3029 = vmatpush3.bf16.msra.mxu0 %v3237_v49 }
 0xa23   :  { %3042 = vmatprep.subr.bf16.mxu0 %v3356_v2 }
 0xadd   :  { %v998_v50 = vpop.f32.mrf.mxu0 }
 0xadf   :  { %v3018_v51 = vpop.f32.mrf.mxu0 }
 0xae0   :  { %v2753_v51 = vld [vmem:[%s3974_s1 + $0x9] ss:$0 sm:$0xff] }
 0xae1   :  { %v1001_v52 = vpop.f32.mrf.mxu0  ;;  %v1046_v53 = vpop.f32.mrf.mxu1 }
 0xae2   :  { %v3214_v54 = vpack.i.bf16 %v1046_v53, %v998_v50 }
 0xae3   :  { %v3019_v55 = vpop.f32.mrf.mxu0  ;;  %v3024_v56 = vpop.f32.mrf.mxu1 }
 0xae4   :  { %3215 = vrot.lane.b32.xlu0 %v3214_v54, %s3371_s0  ;;  %v3241_v56 = vld [vmem:[%s3979_s6 + $0x10] sm:$0xff]  }
 0xae5   :  { %v1049_v57 = vpop.f32.mrf.mxu1 }
 0xae6   :  { %v3242_v57 = vld [vmem:[%s3979_s6 + $0x8] sm:$0xff]  }
 0xae7   :  { %v3025_v58 = vpop.f32.mrf.mxu1 }
 0xae8   :  { %v3243_v58 = vld [vmem:[%s3979_s6] sm:$0xff]  }
 0xb56   :  { %v3216_v1 = vpop.permute.xlu0 %3215 }
 0xb57   :  { %v3218_v5 = vunpack.i.h.bf16 %v3216_v1  ;;  %v3217_v6 = vunpack.i.l.bf16 %v3216_v1 }
 0xb59   :  { %v1083_v12 = vsel %vm1081_vm7, %v1080_v8, %v3218_v5  ;;  %v1082_v13 = vsel %vm1081_vm7, %v1079_v9, %v3217_v6  ;;  %v1269_v9 = vld [vmem:[%s3979_s6 + $0x20] sm:$0x1] }
 0xb5a   :  { %v1090_v14 = vpack.c.bf16 %v1083_v12, %v1082_v13  ;;  %v1270_v12 = vunpack.c.l.bf16 %v1269_v9 }
 0xb5c   :  { %3031 = vmatmul.mubr.msk.bf16.vlgmr.msra.gmra.mxu0 %vm117_vm3, %v1090_v14  ;;  %v1275_v13 = vrot.slane %v1270_v12, %v3458_v25 }
 0xb5d   :  { %3050 = vmatprep.mubr.msk.bf16.mxu0 %vm3357_vm1, %v3356_v2  ;;  %3043 = vmatpush3.bf16.msra.mxu0 %v3240_v39 }
 0xb5e   :  { %3044 = vmatprep.subr.bf16.mxu0 %v3356_v2 }
 0xb61   :  { %3045 = vmatpush3.bf16.msra.mxu0 %v3241_v56 }
 0xb62   :  { %3046 = vmatprep.subr.bf16.mxu0 %v3356_v2 }
 0xb65   :  { %3047 = vmatpush3.bf16.msra.mxu0 %v3242_v57 }
 0xb66   :  { %3048 = vmatprep.subr.bf16.mxu0 %v3356_v2 }
 0xb69   :  { %3049 = vmatpush3.bf16.msra.mxu0 %v3243_v58 }
 0xb6a   :  { %3068 = vmatprep.subr.bf16.mxu0 %v3356_v2 }
 0xc1c   :  { %v1144_v16 = vpop.f32.mrf.mxu0 }
 0xc1d   :  { %v1145_v18 = vadd.f32 %v1144_v16, %v1094_v15 }
 0xc1e   :  { %v3032_v19 = vpop.f32.mrf.mxu0 }
 0xc1f   :  { %v1151_v23 = vadd.f32 %v1145_v18, %v3446_v21 }
 0xc20   :  { %v1147_v24 = vpop.f32.mrf.mxu0 }
 0xc21   :  { %v1148_v26 = vadd.f32 %v1147_v24, %v1094_v15  ;;  %v1153_v27 = vsel %vm117_vm3, %v1151_v23, 0.0 }
 0xc22   :  { %1154 = vadd.xlane.f32.xlu1 %v1153_v27  ;;  %v3033_v28 = vpop.f32.mrf.mxu0 }
 0xc23   :  { %v1152_v29 = vadd.f32 %v1148_v26, %v3448_v22  ;;  %v3238_v22 = vld [vmem:[%s3978_s5 + $0x8] sm:$0xff]  }
 0xc24   :  { %3035 = vmatpush3.bf16.msra.mxu1 %v3238_v22 }
 0xc25   :  { %v1156_v30 = vsel %vm117_vm3, %v1152_v29, 0.0  ;;  %3036 = vmatprep.subr.bf16.mxu1 %v3356_v2 }
 0xc26   :  { %1157 = vadd.xlane.f32.xlu0 %v1156_v30 }
 0xc28   :  { %3037 = vmatpush3.bf16.msra.mxu1 %v3239_v38 }
 0xc29   :  { %3054 = vmatprep.subr.bf16.mxu1 %v3356_v2 }
 0xcab   :  { %v1155_v32 = vpop.xlane.xlu1 %1154 }
 0xcac   :  { %v1160_v33 = vmul.f32 0.03125, %v1155_v32 }
 0xcae   :  { %v1162_v34 = vsub.f32 %v1151_v23, %v1160_v33 }
 0xcaf   :  { %v1158_v36 = vpop.xlane.xlu0 %1157 }
 0xcb0   :  { %v1161_v37 = vmul.f32 0.03125, %v1158_v36  ;;  %v1164_v31 = vmul.f32 %v1162_v34, %v1162_v34 }
 0xcb2   :  { %v1163_v7 = vsub.f32 %v1152_v29, %v1161_v37  ;;  %v1166_v21 = vsel %vm117_vm3, %v1164_v31, 0.0 }
 0xcb3   :  { %1167 = vadd.xlane.f32.xlu0 %v1166_v21  ;;  %v3245_v21 = vld [vmem:[%s3976_s3 + $0x14] sm:$0xff]  }
 0xcb4   :  { %v1165_v10 = vmul.f32 %v1163_v7, %v1163_v7 }
 0xcb6   :  { %v1169_v11 = vsel %vm117_vm3, %v1165_v10, 0.0 }
 0xcb7   :  { %1170 = vadd.xlane.f32.xlu1 %v1169_v11 }
 0xd3c   :  { %v1168_v40 = vpop.xlane.xlu0 %1167 }
 0xd3d   :  { %v1172_v41 = vmul.f32 0.03125, %v1168_v40 }
 0xd3f   :  { %v1174_v42 = vadd.f32 1e-05, %v1172_v41 }
 0xd40   :  { %v1171_v43 = vpop.xlane.xlu1 %1170 }
 0xd41   :  { %3286 = vrsqrt.f32 %v1174_v42  ;;  %v1173_v44 = vmul.f32 0.03125, %v1171_v43  ;;  %v2762_v43 = vld [vmem:[%s3974_s1 + $0xa] ss:$0 sm:$0xff] }
 0xd43   :  { %v1175_v45 = vadd.f32 1e-05, %v1173_v44 }
 0xd45   :  { %3288 = vrsqrt.f32 %v1175_v45 }
 0xd4e   :  { %v3287_v46 = vpop.eup %3286 }
 0xd4f   :  { %v1178_v47 = vmul.f32 %v3287_v46, %v1162_v34 }
 0xd51   :  { %v1184_v50 = vmul.f32 %v2752_v35, %v1178_v47  ;;  %v2763_v47 = vld [vmem:[%s3974_s1 + $0xb] ss:$0 sm:$0xff] }
 0xd52   :  { %v3289_v48 = vpop.eup %3288 }
 0xd53   :  { %v1179_v49 = vmul.f32 %v3289_v48, %v1163_v7  ;;  %v1190_v53 = vadd.f32 %v2753_v51, %v1184_v50  ;;  %v3244_v7 = vld [vmem:[%s3976_s3 + $0x1c] sm:$0xff]  }
 0xd55   :  { %v1185_v52 = vmul.f32 %v2752_v35, %v1179_v49 }
 0xd57   :  { %v1191_v54 = vadd.f32 %v2753_v51, %v1185_v52  ;;  %v2768_v51 = vld [vmem:[%s3976_s3 + $0x24] sm:$0x1] }
 0xd58   :  { %v1395_v52 = vunpack.c.l.bf16 %v2768_v51 }
 0xd59   :  { %v1198_v55 = vpack.c.bf16 %v1191_v54, %v1190_v53 }
 0xd5b   :  { %3039 = vmatmul.mubr.msk.bf16.vlgmr.msra.gmra.mxu1 %vm117_vm3, %v1198_v55 }
 0xd5c   :  { %3058 = vmatprep.mubr.msk.bf16.mxu1 %vm3357_vm1, %v3356_v2  ;;  %3055 = vmatpush3.bf16.msra.mxu1 %v3244_v7 }
 0xd5d   :  { %3056 = vmatprep.subr.bf16.mxu1 %v3356_v2 }
 0xd60   :  { %3057 = vmatpush3.bf16.msra.mxu1 %v3245_v21 }
 0xd61   :  { %3062 = vmatprep.subr.bf16.mxu1 %v3356_v2 }
 0xe1b   :  { %v1252_v62 = vpop.f32.mrf.mxu1 }
 0xe1c   :  { %v1253_v0 = vadd.f32 %v1252_v62, %v1202_v61 }
 0xe1d   :  { %v3040_v63 = vpop.f32.mrf.mxu1 }
 0xe1e   :  { %v1259_v5 = vmax.f32 %v1253_v0, 0.0 }
 0xe1f   :  { %v1255_v1 = vpop.f32.mrf.mxu1 }
 0xe20   :  { %v1256_v3 = vadd.f32 %v1255_v1, %v1202_v61 }
 0xe21   :  { %v3041_v4 = vpop.f32.mrf.mxu1 }
 0xe22   :  { %v1260_v6 = vmax.f32 %v1256_v3, 0.0 }
 0xe24   :  { %v1271_v8 = vpack.c.bf16 %v1260_v6, %v1259_v5 }
 0xe26   :  { %3051 = vmatmul.mubr.msk.bf16.vlgmr.msra.gmra.mxu0 %vm1300_vm8, %v1271_v8 }
 0xe27   :  { %3070 = vmatprep.mubr.msk.bf16.mxu0 %vm3357_vm1, %v3356_v2 }
 0xee6   :  { %v1338_v14 = vpop.f32.mrf.mxu0 }
 0xee7   :  { %v1339_v17 = vadd.f32 %v1338_v14, %v1275_v13 }
 0xee8   :  { %v3052_v20 = vpop.f32.mrf.mxu0 }
 0xee9   :  { %v1345_v15 = vadd.f32 %v1339_v17, %v1190_v53  ;;  %v1400_v53 = vrot.slane %v1395_v52, %v3458_v25 }
 0xeea   :  { %v1341_v16 = vpop.f32.mrf.mxu0 }
 0xeeb   :  { %v1342_v18 = vadd.f32 %v1341_v16, %v1275_v13  ;;  %v1347_v19 = vsel %vm117_vm3, %v1345_v15, 0.0 }
 0xeec   :  { %1348 = vadd.xlane.f32.xlu0 %v1347_v19  ;;  %v3053_v23 = vpop.f32.mrf.mxu0 }
 0xeed   :  { %v1346_v24 = vadd.f32 %v1342_v18, %v1191_v54 }
 0xeef   :  { %v1350_v26 = vsel %vm117_vm3, %v1346_v24, 0.0 }
 0xef0   :  { %1351 = vadd.xlane.f32.xlu1 %v1350_v26 }
 0xf75   :  { %v1349_v27 = vpop.xlane.xlu0 %1348 }
 0xf76   :  { %v1353_v28 = vmul.f32 0.03125, %v1349_v27 }
 0xf78   :  { %v1355_v29 = vsub.f32 %v1345_v15, %v1353_v28 }
 0xf79   :  { %v1352_v30 = vpop.xlane.xlu1 %1351 }
 0xf7a   :  { %v1354_v32 = vmul.f32 0.03125, %v1352_v30  ;;  %v1357_v33 = vmul.f32 %v1355_v29, %v1355_v29 }
 0xf7c   :  { %v1356_v34 = vsub.f32 %v1346_v24, %v1354_v32  ;;  %v1359_v36 = vsel %vm117_vm3, %v1357_v33, 0.0 }
 0xf7d   :  { %1360 = vadd.xlane.f32.xlu0 %v1359_v36 }
 0xf7e   :  { %v1358_v37 = vmul.f32 %v1356_v34, %v1356_v34 }
 0xf80   :  { %v1362_v31 = vsel %vm117_vm3, %v1358_v37, 0.0 }
 0xf81   :  { %1363 = vadd.xlane.f32.xlu1 %v1362_v31 }
0x1006   :  { %v1361_v10 = vpop.xlane.xlu0 %1360 }
0x1007   :  { %v1365_v11 = vmul.f32 0.03125, %v1361_v10 }
0x1009   :  { %v1367_v22 = vadd.f32 1e-05, %v1365_v11 }
0x100a   :  { %v1364_v38 = vpop.xlane.xlu1 %1363 }
0x100b   :  { %3290 = vrsqrt.f32 %v1367_v22  ;;  %v1366_v39 = vmul.f32 0.03125, %v1364_v38 }
0x100d   :  { %v1368_v40 = vadd.f32 1e-05, %v1366_v39 }
0x100f   :  { %3292 = vrsqrt.f32 %v1368_v40 }
0x1018   :  { %v3291_v41 = vpop.eup %3290 }
0x1019   :  { %v1371_v42 = vmul.f32 %v3291_v41, %v1355_v29 }
0x101b   :  { %v1377_v46 = vmul.f32 %v2762_v43, %v1371_v42 }
0x101c   :  { %v3293_v44 = vpop.eup %3292 }
0x101d   :  { %v1372_v45 = vmul.f32 %v3293_v44, %v1356_v34  ;;  %v3714_v48 = vadd.f32 %v2763_v47, %v1377_v46 }
0x101f   :  { %v1378_v35 = vmul.f32 %v2762_v43, %v1372_v45 }
0x1021   :  { %v3716_v49 = vadd.f32 %v2763_v47, %v1378_v35 }
0x1023   :  { %v1396_v50 = vpack.c.bf16 %v3716_v49, %v3714_v48 }
0x1025   :  { %3059 = vmatmul.mubr.msk.bf16.vlgmr.msra.gmra.mxu1 %vm117_vm3, %v1396_v50 }
0x1026   :  { %3064 = vmatprep.mubr.msk.bf16.mxu1 %vm3357_vm1, %v3356_v2 }
0x10e5   :  { %v1450_v54 = vpop.f32.mrf.mxu1 }
0x10e6   :  { %v1451_v55 = vadd.f32 %v1450_v54, %v1400_v53 }
0x10e7   :  { %v3060_v56 = vpop.f32.mrf.mxu1 }
0x10e8   :  { %v3727_v57 = vpack.c.bf16 %v1451_v55, %v1451_v55 }
0x10e9   :  { %v1453_v58 = vpop.f32.mrf.mxu1 }
0x10ea   :  { %v1454_v59 = vadd.f32 %v1453_v58, %v1400_v53  ;;  %1460 = vrot.lane.b32.xlu0 %v3727_v57, %s3358_s15 }
0x10eb   :  { %v3061_v60 = vpop.f32.mrf.mxu1 }
0x10ec   :  { %v3731_v61 = vpack.c.bf16 %v1454_v59, %v1454_v59 }
0x10ee   :  { %1509 = vrot.lane.b32.xlu1 %v3731_v61, %s3358_s15 }
0x115c   :  { %v1461_v62 = vpop.permute.xlu0 %1460 }
0x115d   :  { %v1466_v63 = vsel %vm167_vm4, %v1461_v62, 0 }
0x115e   :  { %3063 = vmatpush3.bf16.xpose.msra.mxu1 %v1466_v63 }
0x115f   :  { %3074 = vmatprep.subr.bf16.mxu1 %v3356_v2 }
0x1160   :  { %v1510_v0 = vpop.permute.xlu1 %1509 }
0x1161   :  { %v1515_v1 = vsel %vm167_vm4, %v1510_v0, 0 }
0x1162   :  { %3069 = vmatpush3.bf16.xpose.msra.mxu0 %v1515_v1 }
0x1163   :  { %3080 = vmatprep.subr.bf16.mxu0 %v3356_v2 }
0x1165   :  { %3065 = vmatmul.mubr.msk.bf16.vlgmr.msra.gmra.mxu1 %vm167_vm4, %v3727_v57 }
0x1166   :  { %3076 = vmatprep.mubr.msk.bf16.mxu1 %vm3357_vm1, %v3356_v2 }
0x1169   :  { %3071 = vmatmul.mubr.msk.bf16.vlgmr.msra.gmra.mxu0 %vm167_vm4, %v3731_v61 }
0x116a   :  { %3082 = vmatprep.mubr.msk.bf16.mxu0 %vm3357_vm1, %v3356_v2 }
0x1225   :  { %v1502_v3 = vpop.f32.mrf.mxu1 }
0x1226   :  { %v1557_v4 = vmul.f32 0.35355338, %v1502_v3 }
0x1227   :  { %v3066_v5 = vpop.f32.mrf.mxu1 }
0x1228   :  { %v1559_v6 = vsel %vm167_vm4, %v1557_v4, -inf }
0x1229   :  { %1560 = vmax.xlane.f32.xlu1 %v1559_v6  ;;  %v1505_v8 = vpop.f32.mrf.mxu1  ;;  %v1551_v9 = vpop.f32.mrf.mxu0 }
0x122a   :  { %v1558_v12 = vmul.f32 0.35355338, %v1551_v9 }
0x122b   :  { %v3067_v13 = vpop.f32.mrf.mxu1  ;;  %v3072_v14 = vpop.f32.mrf.mxu0 }
0x122c   :  { %v1562_v17 = vsel %vm167_vm4, %v1558_v12, -inf }
0x122d   :  { %1563 = vmax.xlane.f32.xlu0 %v1562_v17  ;;  %v1554_v20 = vpop.f32.mrf.mxu0 }
0x122f   :  { %v3073_v15 = vpop.f32.mrf.mxu0 }
0x123a   :  { %1631 = vrot.lane.b32.xlu1 %v3731_v61, %s3359_s16 }
0x1243   :  { %1583 = vrot.lane.b32.xlu0 %v3727_v57, %s3359_s16  ;;  %s3372_s16 = smov [#allocation2]  }
0x12b2   :  { %v1561_v16 = vpop.xlane.xlu1 %1560 }
0x12b3   :  { %v1565_v18 = vsub.f32 %v1557_v4, %v1561_v16 }
0x12b5   :  { %v1567_v19 = vmul.f32 1.442695, %v1565_v18 }
0x12b6   :  { %v1632_v23 = vpop.permute.xlu1 %1631  ;;  %v1564_v24 = vpop.xlane.xlu0 %1563 }
0x12b7   :  { %3294 = vpow2.f32 %v1567_v19  ;;  %v1637_v26 = vsel %vm294_vm5, %v1632_v23, 0  ;;  %v1566_v27 = vsub.f32 %v1558_v12, %v1564_v24 }
0x12b8   :  { %3081 = vmatpush3.bf16.msra.mxu0 %v1637_v26 }
0x12b9   :  { %v1569_v28 = vmul.f32 1.442695, %v1566_v27  ;;  %3092 = vmatprep.subr.bf16.mxu0 %v3356_v2 }
0x12ba   :  { %v1584_v29 = vpop.permute.xlu0 %1583 }
0x12bb   :  { %3296 = vpow2.f32 %v1569_v28  ;;  %v1589_v30 = vsel %vm294_vm5, %v1584_v29, 0 }
0x12bc   :  { %3075 = vmatpush3.bf16.msra.mxu1 %v1589_v30 }
0x12bd   :  { %3086 = vmatprep.subr.bf16.mxu1 %v3356_v2 }
0x12c4   :  { %v3295_v32 = vpop.eup %3294 }
0x12c5   :  { %v1571_v33 = vsel %vm167_vm4, %v3295_v32, 0.0 }
0x12c6   :  { %1572 = vadd.xlane.f32.xlu0 %v1571_v33 }
0x12c8   :  { %v3297_v34 = vpop.eup %3296 }
0x12c9   :  { %v1574_v36 = vsel %vm167_vm4, %v3297_v34, 0.0 }
0x12ca   :  { %1575 = vadd.xlane.f32.xlu1 %v1574_v36 }
0x12db   :  { %1681 = vrot.lane.b32.xlu1 %v3727_v57, %s3360_s17 }
0x12dc   :  { %1731 = vrot.lane.b32.xlu0 %v3731_v61, %s3360_s17  ;;  %s2718_s17 = sshll.u32 %s3372_s16, 4  ;;  %s2719_s17 = int_to_ptr.vmem [resolvable:$true] %s2718_s17 }
0x12dd   :  { %p3339_p1 = scmp.lt.s32.totalorder %s2719_s17, %s2719_s17 }
0x12df   :  { %1679 = vrot.lane.b32.xlu1 %v3727_v57, %s3361_s18 }
0x12e0   :  { %1729 = vrot.lane.b32.xlu0 %v3731_v61, %s3361_s18  ;;  %s3334_s18 = scalar_lea.vmem %s2719_s17, 32 }
0x12e1   :  { %p3335_p0 = scmp.ne.s32.totalorder %s2719_s17, %s3334_s18  ;;  %p3340_p2 = scmp.lt.s32.totalorder %s3334_s18, %s3334_s18 }
0x12e3   :  { %p3341_p3 = por %p3340_p2, %p3339_p1 }
0x12e5   :  { %p3342_p4 = pnand %p3341_p3, %p3335_p0 }
0x134f   :  { %v1573_v37 = vpop.xlane.xlu0 %1572 }
0x1350   :  { %3298 = vrcp.f32 %v1573_v37 }
0x1353   :  { %v1576_v31 = vpop.xlane.xlu1 %1575  ;;  %v1732_v40 = vpop.permute.xlu0 %1731 }
0x1354   :  { %3300 = vrcp.f32 %v1576_v31  ;;  %v1737_v42 = vsel %vm167_vm4, %v1732_v40, 0 }
0x1357   :  { %v1682_v10 = vpop.permute.xlu1 %1681  ;;  %v1730_v44 = vpop.permute.xlu0 %1729 }
0x1358   :  { %v1687_v38 = vsel %vm167_vm4, %v1682_v10, 0 }
0x135b   :  { %v1680_v43 = vpop.permute.xlu1 %1679 }
0x135d   :  { %v3299_v7 = vpop.eup %3298 }
0x135e   :  { %v1578_v21 = vmul.f32 %v3299_v7, %v3295_v32 }
0x1360   :  { %v1581_v11 = vpack.c.bf16 %v1578_v21, %v1578_v21 }
0x1361   :  { %v3301_v22 = vpop.eup %3300 }
0x1362   :  { %3077 = vmatmul.mubr.msk.bf16.vlgmr.msra.gmra.mxu1 %vm167_vm4, %v1581_v11  ;;  %v1580_v39 = vmul.f32 %v3301_v22, %v3297_v34 }
0x1363   :  { %3087 = vmatpush3.bf16.xpose.msra.mxu1 %v1687_v38  ;;  %3088 = vmatprep.mubr.msk.bf16.mxu1 %vm3357_vm1, %v3356_v2 }
0x1364   :  { %v1582_v41 = vpack.c.bf16 %v1580_v39, %v1580_v39  ;;  %3098 = vmatprep.subr.bf16.mxu1 %v3356_v2 }
0x1366   :  { %3083 = vmatmul.mubr.msk.bf16.vlgmr.msra.gmra.mxu0 %vm167_vm4, %v1582_v41 }
0x1367   :  { %3093 = vmatpush3.bf16.xpose.msra.mxu0 %v1737_v42  ;;  %3094 = vmatprep.mubr.msk.bf16.mxu0 %vm3357_vm1, %v3356_v2 }
0x1368   :  { %3104 = vmatprep.subr.bf16.mxu0 %v3356_v2 }
0x136a   :  { %3089 = vmatmul.mubr.msk.bf16.vlgmr.msra.gmra.mxu1 %vm167_vm4, %v1680_v43 }
0x136b   :  { %3100 = vmatprep.mubr.msk.bf16.mxu1 %vm3357_vm1, %v3356_v2 }
0x136e   :  { %3095 = vmatmul.mubr.msk.bf16.vlgmr.msra.gmra.mxu0 %vm167_vm4, %v1730_v44 }
0x136f   :  { %3106 = vmatprep.mubr.msk.bf16.mxu0 %vm3357_vm1, %v3356_v2 }
0x1422   :  { %v3783_v45 = vpop.f32.mrf.mxu1 }
0x1424   :  { %v3078_v46 = vpop.f32.mrf.mxu1 }
0x1426   :  { %v1628_v47 = vpop.f32.mrf.mxu1  ;;  %v3785_v35 = vpop.f32.mrf.mxu0 }
0x1428   :  { %v3079_v50 = vpop.f32.mrf.mxu1  ;;  %v3084_v51 = vpop.f32.mrf.mxu0 }
0x142a   :  { %v1676_v52 = vpop.f32.mrf.mxu0  ;;  %v1723_v53 = vpop.f32.mrf.mxu1 }
0x142b   :  { %v1779_v54 = vmul.f32 0.35355338, %v1723_v53 }
0x142c   :  { %v3085_v55 = vpop.f32.mrf.mxu0  ;;  %v3090_v56 = vpop.f32.mrf.mxu1 }
0x142d   :  { %v1781_v58 = vsel %vm167_vm4, %v1779_v54, -inf }
0x142e   :  { %1782 = vmax.xlane.f32.xlu1 %v1781_v58  ;;  %v1726_v59 = vpop.f32.mrf.mxu1  ;;  %v1773_v60 = vpop.f32.mrf.mxu0 }
0x142f   :  { %v1780_v62 = vmul.f32 0.35355338, %v1773_v60 }
0x1430   :  { %v3091_v63 = vpop.f32.mrf.mxu1  ;;  %v3096_v0 = vpop.f32.mrf.mxu0 }
0x1431   :  { %v1784_v1 = vsel %vm167_vm4, %v1780_v62, -inf }
0x1432   :  { %1785 = vmax.xlane.f32.xlu0 %v1784_v1  ;;  %v1776_v3 = vpop.f32.mrf.mxu0 }
0x1434   :  { %v3097_v4 = vpop.f32.mrf.mxu0 }
0x143f   :  { %1853 = vrot.lane.b32.xlu1 %v3731_v61, %s3362_s19 }
0x1448   :  { %1805 = vrot.lane.b32.xlu0 %v3727_v57, %s3362_s19 }
0x14b7   :  { %v1783_v5 = vpop.xlane.xlu1 %1782 }
0x14b8   :  { %v1787_v6 = vsub.f32 %v1779_v54, %v1783_v5 }
0x14ba   :  { %v1789_v8 = vmul.f32 1.442695, %v1787_v6 }
0x14bb   :  { %v1854_v9 = vpop.permute.xlu1 %1853  ;;  %v1786_v12 = vpop.xlane.xlu0 %1785 }
0x14bc   :  { %3302 = vpow2.f32 %v1789_v8  ;;  %v1859_v13 = vsel %vm294_vm5, %v1854_v9, 0  ;;  %v1788_v14 = vsub.f32 %v1780_v62, %v1786_v12 }
0x14bd   :  { %3105 = vmatpush3.bf16.msra.mxu0 %v1859_v13 }
0x14be   :  { %v1791_v17 = vmul.f32 1.442695, %v1788_v14  ;;  %3116 = vmatprep.subr.bf16.mxu0 %v3356_v2 }
0x14bf   :  { %v1806_v20 = vpop.permute.xlu0 %1805 }
0x14c0   :  { %3304 = vpow2.f32 %v1791_v17  ;;  %v1811_v15 = vsel %vm294_vm5, %v1806_v20, 0 }
0x14c1   :  { %3099 = vmatpush3.bf16.msra.mxu1 %v1811_v15 }
0x14c2   :  { %3110 = vmatprep.subr.bf16.mxu1 %v3356_v2 }
0x14c9   :  { %v3303_v16 = vpop.eup %3302 }
0x14ca   :  { %v1793_v18 = vsel %vm167_vm4, %v3303_v16, 0.0 }
0x14cb   :  { %1794 = vadd.xlane.f32.xlu0 %v1793_v18 }
0x14cd   :  { %v3305_v19 = vpop.eup %3304 }
0x14ce   :  { %v1796_v23 = vsel %vm167_vm4, %v3305_v19, 0.0 }
0x14cf   :  { %1797 = vadd.xlane.f32.xlu1 %v1796_v23 }
0x14e0   :  { %1903 = vrot.lane.b32.xlu1 %v3727_v57, %s3363_s20 }
0x14e1   :  { %1953 = vrot.lane.b32.xlu0 %v3731_v61, %s3363_s20 }
0x14e4   :  { %1901 = vrot.lane.b32.xlu1 %v3727_v57, %s3364_s21 }
0x14e5   :  { %1951 = vrot.lane.b32.xlu0 %v3731_v61, %s3364_s21 }
0x1554   :  { %v1795_v24 = vpop.xlane.xlu0 %1794 }
0x1555   :  { %3306 = vrcp.f32 %v1795_v24 }
0x1558   :  { %v1798_v26 = vpop.xlane.xlu1 %1797  ;;  %v1954_v36 = vpop.permute.xlu0 %1953 }
0x1559   :  { %3308 = vrcp.f32 %v1798_v26  ;;  %v1959_v31 = vsel %vm167_vm4, %v1954_v36, 0 }
0x155c   :  { %v1904_v29 = vpop.permute.xlu1 %1903  ;;  %v1952_v21 = vpop.permute.xlu0 %1951 }
0x155d   :  { %v1909_v33 = vsel %vm167_vm4, %v1904_v29, 0 }
0x1560   :  { %v1902_v7 = vpop.permute.xlu1 %1901 }
0x1562   :  { %v3307_v27 = vpop.eup %3306 }
0x1563   :  { %v1800_v28 = vmul.f32 %v3307_v27, %v3303_v16 }
0x1565   :  { %v1803_v30 = vpack.c.bf16 %v1800_v28, %v1800_v28 }
0x1566   :  { %v3309_v32 = vpop.eup %3308 }
0x1567   :  { %3101 = vmatmul.mubr.msk.bf16.vlgmr.msra.gmra.mxu1 %vm167_vm4, %v1803_v30  ;;  %v1802_v34 = vmul.f32 %v3309_v32, %v3305_v19 }
0x1568   :  { %3111 = vmatpush3.bf16.xpose.msra.mxu1 %v1909_v33  ;;  %3112 = vmatprep.mubr.msk.bf16.mxu1 %vm3357_vm1, %v3356_v2 }
0x1569   :  { %v1804_v37 = vpack.c.bf16 %v1802_v34, %v1802_v34  ;;  %3122 = vmatprep.subr.bf16.mxu1 %v3356_v2 }
0x156b   :  { %3107 = vmatmul.mubr.msk.bf16.vlgmr.msra.gmra.mxu0 %vm167_vm4, %v1804_v37 }
0x156c   :  { %3117 = vmatpush3.bf16.xpose.msra.mxu0 %v1959_v31  ;;  %3118 = vmatprep.mubr.msk.bf16.mxu0 %vm3357_vm1, %v3356_v2 }
0x156d   :  { %3128 = vmatprep.subr.bf16.mxu0 %v3356_v2 }
0x156f   :  { %3113 = vmatmul.mubr.msk.bf16.vlgmr.msra.gmra.mxu1 %vm167_vm4, %v1902_v7 }
0x1570   :  { %3124 = vmatprep.mubr.msk.bf16.mxu1 %vm3357_vm1, %v3356_v2 }
0x1573   :  { %3119 = vmatmul.mubr.msk.bf16.vlgmr.msra.gmra.mxu0 %vm167_vm4, %v1952_v21 }
0x1574   :  { %3130 = vmatprep.mubr.msk.bf16.mxu0 %vm3357_vm1, %v3356_v2 }
0x1627   :  { %v3823_v10 = vpop.f32.mrf.mxu1 }
0x1629   :  { %v3102_v11 = vpop.f32.mrf.mxu1 }
0x162b   :  { %v1850_v22 = vpop.f32.mrf.mxu1  ;;  %v3825_v38 = vpop.f32.mrf.mxu0 }
0x162c   :  { %v3219_v39 = vpack.i.bf16 %v3825_v38, %v3823_v10 }
0x162d   :  { %v3103_v40 = vpop.f32.mrf.mxu1  ;;  %v3108_v41 = vpop.f32.mrf.mxu0 }
0x162f   :  { %v1898_v42 = vpop.f32.mrf.mxu0  ;;  %v1945_v43 = vpop.f32.mrf.mxu1 }
0x1630   :  { %v2001_v44 = vmul.f32 0.35355338, %v1945_v43 }
0x1631   :  { %v3109_v46 = vpop.f32.mrf.mxu0  ;;  %v3114_v47 = vpop.f32.mrf.mxu1 }
0x1632   :  { %v2003_v50 = vsel %vm167_vm4, %v2001_v44, -inf }
0x1633   :  { %2004 = vmax.xlane.f32.xlu1 %v2003_v50  ;;  %v1948_v51 = vpop.f32.mrf.mxu1  ;;  %v1995_v52 = vpop.f32.mrf.mxu0 }
0x1634   :  { %v2002_v53 = vmul.f32 0.35355338, %v1995_v52 }
0x1635   :  { %v3115_v54 = vpop.f32.mrf.mxu1  ;;  %v3120_v55 = vpop.f32.mrf.mxu0 }
0x1636   :  { %v2006_v56 = vsel %vm167_vm4, %v2002_v53, -inf }
0x1637   :  { %2007 = vmax.xlane.f32.xlu0 %v2006_v56  ;;  %v1998_v58 = vpop.f32.mrf.mxu0 }
0x1639   :  { %v3121_v59 = vpop.f32.mrf.mxu0 }
0x1644   :  { %2075 = vrot.lane.b32.xlu1 %v3731_v61, %s3365_s22 }
0x164d   :  { %2027 = vrot.lane.b32.xlu0 %v3727_v57, %s3365_s22 }
0x16bc   :  { %v2005_v60 = vpop.xlane.xlu1 %2004 }
0x16bd   :  { %v2009_v62 = vsub.f32 %v2001_v44, %v2005_v60 }
0x16bf   :  { %v2011_v63 = vmul.f32 1.442695, %v2009_v62 }
0x16c0   :  { %v2076_v0 = vpop.permute.xlu1 %2075  ;;  %v2008_v1 = vpop.xlane.xlu0 %2007 }
0x16c1   :  { %3310 = vpow2.f32 %v2011_v63  ;;  %v2081_v3 = vsel %vm294_vm5, %v2076_v0, 0  ;;  %v2010_v4 = vsub.f32 %v2002_v53, %v2008_v1 }
0x16c2   :  { %3129 = vmatpush3.bf16.msra.mxu0 %v2081_v3 }
0x16c3   :  { %v2013_v5 = vmul.f32 1.442695, %v2010_v4  ;;  %3140 = vmatprep.subr.bf16.mxu0 %v3356_v2 }
0x16c4   :  { %v2028_v6 = vpop.permute.xlu0 %2027 }
0x16c5   :  { %3312 = vpow2.f32 %v2013_v5  ;;  %v2033_v8 = vsel %vm294_vm5, %v2028_v6, 0 }
0x16c6   :  { %3123 = vmatpush3.bf16.msra.mxu1 %v2033_v8 }
0x16c7   :  { %3134 = vmatprep.subr.bf16.mxu1 %v3356_v2 }
0x16ce   :  { %v3311_v9 = vpop.eup %3310 }
0x16cf   :  { %v2015_v12 = vsel %vm167_vm4, %v3311_v9, 0.0 }
0x16d0   :  { %2016 = vadd.xlane.f32.xlu0 %v2015_v12 }
0x16d2   :  { %v3313_v13 = vpop.eup %3312 }
0x16d3   :  { %v2018_v14 = vsel %vm167_vm4, %v3313_v13, 0.0 }
0x16d4   :  { %2019 = vadd.xlane.f32.xlu1 %v2018_v14  ;;  %v3246_v14 = vld [vmem:[%s3977_s4 + $0x1c] sm:$0xff]  }
0x16e5   :  { %2125 = vrot.lane.b32.xlu1 %v3727_v57, %s3366_s23 }
0x16e6   :  { %2175 = vrot.lane.b32.xlu0 %v3731_v61, %s3366_s23 }
0x16e9   :  { %2123 = vrot.lane.b32.xlu1 %v3727_v57, %s3367_s24 }
0x16ea   :  { %2173 = vrot.lane.b32.xlu0 %v3731_v61, %s3367_s24 }
0x1759   :  { %v2017_v17 = vpop.xlane.xlu0 %2016 }
0x175a   :  { %3314 = vrcp.f32 %v2017_v17  ;;  %v3247_v17 = vld [vmem:[%s3977_s4 + $0x14] sm:$0xff]  }
0x175d   :  { %v2020_v20 = vpop.xlane.xlu1 %2019  ;;  %v2176_v27 = vpop.permute.xlu0 %2175 }
0x175e   :  { %3316 = vrcp.f32 %v2020_v20  ;;  %v2181_v29 = vsel %vm167_vm4, %v2176_v27, 0 }
0x1761   :  { %v2126_v18 = vpop.permute.xlu1 %2125  ;;  %v2174_v32 = vpop.permute.xlu0 %2173 }
0x1762   :  { %v2131_v24 = vsel %vm167_vm4, %v2126_v18, 0 }
0x1765   :  { %v2124_v30 = vpop.permute.xlu1 %2123 }
0x1767   :  { %v3315_v15 = vpop.eup %3314 }
0x1768   :  { %v2022_v16 = vmul.f32 %v3315_v15, %v3311_v9 }
0x176a   :  { %v2025_v19 = vpack.c.bf16 %v2022_v16, %v2022_v16 }
0x176b   :  { %v3317_v23 = vpop.eup %3316 }
0x176c   :  { %3125 = vmatmul.mubr.msk.bf16.vlgmr.msra.gmra.mxu1 %vm167_vm4, %v2025_v19  ;;  %v2024_v26 = vmul.f32 %v3317_v23, %v3313_v13 }
0x176d   :  { %3135 = vmatpush3.bf16.xpose.msra.mxu1 %v2131_v24  ;;  %3136 = vmatprep.mubr.msk.bf16.mxu1 %vm3357_vm1, %v3356_v2 }
0x176e   :  { %v2026_v28 = vpack.c.bf16 %v2024_v26, %v2024_v26  ;;  %3146 = vmatprep.subr.bf16.mxu1 %v3356_v2 }
0x1770   :  { %3131 = vmatmul.mubr.msk.bf16.vlgmr.msra.gmra.mxu0 %vm167_vm4, %v2026_v28 }
0x1771   :  { %3141 = vmatpush3.bf16.xpose.msra.mxu0 %v2181_v29  ;;  %3142 = vmatprep.mubr.msk.bf16.mxu0 %vm3357_vm1, %v3356_v2 }
0x1772   :  { %3152 = vmatprep.subr.bf16.mxu0 %v3356_v2 }
0x1774   :  { %3137 = vmatmul.mubr.msk.bf16.vlgmr.msra.gmra.mxu1 %vm167_vm4, %v2124_v30 }
0x1775   :  { %3148 = vmatprep.mubr.msk.bf16.mxu1 %vm3357_vm1, %v3356_v2 }
0x1778   :  { %3143 = vmatmul.mubr.msk.bf16.vlgmr.msra.gmra.mxu0 %vm167_vm4, %v2174_v32 }
0x1779   :  { %3154 = vmatprep.mubr.msk.bf16.mxu0 %vm3357_vm1, %v3356_v2 }
0x182c   :  { %v2069_v33 = vpop.f32.mrf.mxu1 }
0x182e   :  { %v3126_v34 = vpop.f32.mrf.mxu1 }
0x1830   :  { %v2072_v36 = vpop.f32.mrf.mxu1  ;;  %v2117_v37 = vpop.f32.mrf.mxu0 }
0x1831   :  { %v3224_v31 = vpack.i.bf16 %v2117_v37, %v2069_v33 }
0x1832   :  { %v3127_v7 = vpop.f32.mrf.mxu1  ;;  %v3132_v21 = vpop.f32.mrf.mxu0 }
0x1834   :  { %v2120_v11 = vpop.f32.mrf.mxu0  ;;  %v2167_v22 = vpop.f32.mrf.mxu1 }
0x1835   :  { %v2223_v40 = vmul.f32 0.35355338, %v2167_v22 }
0x1836   :  { %v3133_v41 = vpop.f32.mrf.mxu0  ;;  %v3138_v42 = vpop.f32.mrf.mxu1 }
0x1837   :  { %v2225_v43 = vsel %vm167_vm4, %v2223_v40, -inf }
0x1838   :  { %2226 = vmax.xlane.f32.xlu1 %v2225_v43  ;;  %v2170_v44 = vpop.f32.mrf.mxu1  ;;  %v2217_v46 = vpop.f32.mrf.mxu0 }
0x1839   :  { %v2224_v47 = vmul.f32 0.35355338, %v2217_v46 }
0x183a   :  { %v3139_v50 = vpop.f32.mrf.mxu1  ;;  %v3144_v51 = vpop.f32.mrf.mxu0 }
0x183b   :  { %v2228_v52 = vsel %vm167_vm4, %v2224_v47, -inf }
0x183c   :  { %2229 = vmax.xlane.f32.xlu0 %v2228_v52  ;;  %v2220_v53 = vpop.f32.mrf.mxu0 }
0x183e   :  { %v3145_v54 = vpop.f32.mrf.mxu0 }
0x18c1   :  { %v2227_v55 = vpop.xlane.xlu1 %2226 }
0x18c2   :  { %v2231_v56 = vsub.f32 %v2223_v40, %v2227_v55 }
0x18c4   :  { %v2233_v58 = vmul.f32 1.442695, %v2231_v56 }
0x18c5   :  { %v2230_v59 = vpop.xlane.xlu0 %2229 }
0x18c6   :  { %3318 = vpow2.f32 %v2233_v58  ;;  %v2232_v60 = vsub.f32 %v2224_v47, %v2230_v59 }
0x18c8   :  { %v2235_v62 = vmul.f32 1.442695, %v2232_v60 }
0x18ca   :  { %3320 = vpow2.f32 %v2235_v62 }
0x18d3   :  { %v3319_v63 = vpop.eup %3318 }
0x18d4   :  { %v2237_v0 = vsel %vm167_vm4, %v3319_v63, 0.0 }
0x18d5   :  { %2238 = vadd.xlane.f32.xlu0 %v2237_v0 }
0x18d7   :  { %v3321_v1 = vpop.eup %3320 }
0x18d8   :  { %v2240_v3 = vsel %vm167_vm4, %v3321_v1, 0.0 }
0x18d9   :  { %2241 = vadd.xlane.f32.xlu1 %v2240_v3 }
0x18ea   :  { %2297 = vrot.lane.b32.xlu1 %v3731_v61, %s3368_s25 }
0x18eb   :  { %2249 = vrot.lane.b32.xlu0 %v3727_v57, %s3368_s25 }
0x18ee   :  { %3220 = vrot.lane.b32.xlu1 %v3219_v39, %s3369_s26 }
0x18ef   :  { %3225 = vrot.lane.b32.xlu0 %v3224_v31, %s3370_s27 }
0x195e   :  { %v2239_v4 = vpop.xlane.xlu0 %2238 }
0x195f   :  { %3322 = vrcp.f32 %v2239_v4 }
0x1962   :  { %v2242_v5 = vpop.xlane.xlu1 %2241  ;;  %v2250_v6 = vpop.permute.xlu0 %2249 }
0x1963   :  { %3324 = vrcp.f32 %v2242_v5  ;;  %v2255_v8 = vsel %vm294_vm5, %v2250_v6, 0  ;;  %v3249_v5 = vld [vmem:[%s3978_s5 + $0x14] sm:$0xff]   ;;  %v3250_v6 = vld [vmem:[%s3979_s6 + $0x3c] sm:$0xff]  }
0x1964   :  { %3147 = vmatpush3.bf16.msra.mxu1 %v2255_v8  ;;  %v3251_v8 = vld [vmem:[%s3979_s6 + $0x34] sm:$0xff]  }
0x1965   :  { %3158 = vmatprep.subr.bf16.mxu1 %v3356_v2 }
0x1966   :  { %v2298_v61 = vpop.permute.xlu1 %2297  ;;  %v3226_v32 = vpop.permute.xlu0 %3225 }
0x1967   :  { %v2303_v57 = vsel %vm294_vm5, %v2298_v61, 0  ;;  %v3228_v36 = vunpack.i.h.bf16 %v3226_v32  ;;  %v3227_v37 = vunpack.i.l.bf16 %v3226_v32 }
0x1968   :  { %3153 = vmatpush3.bf16.msra.mxu0 %v2303_v57 }
0x1969   :  { %3166 = vmatprep.subr.bf16.mxu0 %v3356_v2 }
0x196a   :  { %v3221_v28 = vpop.permute.xlu1 %3220 }
0x196b   :  { %v3223_v29 = vunpack.i.h.bf16 %v3221_v28  ;;  %v3222_v30 = vunpack.i.l.bf16 %v3221_v28 }
0x196c   :  { %v3323_v10 = vpop.eup %3322 }
0x196d   :  { %v2244_v38 = vmul.f32 %v3323_v10, %v3319_v63  ;;  %v2370_v33 = vsel %vm167_vm4, %v3785_v35, %v3223_v29  ;;  %v2369_v34 = vsel %vm167_vm4, %v3783_v45, %v3222_v30  ;;  %v2792_v45 = vld [vmem:[%s3977_s4 + $0x24] sm:$0x1] }
0x196e   :  { %v2371_v11 = vsel %vm1078_vm6, %v2369_v34, %v3227_v37  ;;  %v2372_v22 = vsel %vm1078_vm6, %v2370_v33, %v3228_v36  ;;  %v2381_v35 = vunpack.c.l.bf16 %v2792_v45  ;;  %v3252_v34 = vld [vmem:[%s3979_s6 + $0x2c] sm:$0xff]   ;;  %v3253_v36 = vld [vmem:[%s3979_s6 + $0x24] sm:$0xff]  }
0x196f   :  { %v2247_v39 = vpack.c.bf16 %v2244_v38, %v2244_v38  ;;  %v2802_v37 = vld [vmem:[%s3978_s5 + $0x24] sm:$0x1] }
0x1970   :  { %v3325_v9 = vpop.eup %3324  ;;  %v2386_v43 = vrot.slane %v2381_v35, %v3458_v25 }
0x1971   :  { %3149 = vmatmul.mubr.msk.bf16.vlgmr.msra.gmra.mxu1 %vm167_vm4, %v2247_v39  ;;  %v2246_v12 = vmul.f32 %v3325_v9, %v3321_v1 }
0x1972   :  { %3162 = vmatprep.mubr.msk.bf16.mxu1 %vm3357_vm1, %v3356_v2  ;;  %3159 = vmatpush3.bf16.msra.mxu1 %v3246_v14 }
0x1973   :  { %v2248_v13 = vpack.c.bf16 %v2246_v12, %v2246_v12  ;;  %3160 = vmatprep.subr.bf16.mxu1 %v3356_v2 }
0x1975   :  { %3155 = vmatmul.mubr.msk.bf16.vlgmr.msra.gmra.mxu0 %vm167_vm4, %v2248_v13  ;;  %v2796_v13 = vld [vmem:[%s3974_s1 + $0xc] ss:$0 sm:$0xff] }
0x1976   :  { %3170 = vmatprep.mubr.msk.bf16.mxu0 %vm3357_vm1, %v3356_v2  ;;  %3161 = vmatpush3.bf16.msra.mxu1 %v3247_v17  ;;  %v2797_v17 = vld [vmem:[%s3974_s1 + $0xd] ss:$0 sm:$0xff] }
0x1977   :  { %3174 = vmatprep.subr.bf16.mxu1 %v3356_v2 }
0x1a31   :  { %v2291_v20 = vpop.f32.mrf.mxu1 }
0x1a33   :  { %v3150_v15 = vpop.f32.mrf.mxu1 }
0x1a35   :  { %v2294_v16 = vpop.f32.mrf.mxu1  ;;  %v2339_v18 = vpop.f32.mrf.mxu0 }
0x1a36   :  { %v3229_v19 = vpack.i.bf16 %v2339_v18, %v2291_v20 }
0x1a37   :  { %v3151_v23 = vpop.f32.mrf.mxu1  ;;  %v3156_v24 = vpop.f32.mrf.mxu0 }
0x1a38   :  { %3230 = vrot.lane.b32.xlu1 %v3229_v19, %s3371_s0 }
0x1a39   :  { %v2342_v26 = vpop.f32.mrf.mxu0 }
0x1a3b   :  { %v3157_v27 = vpop.f32.mrf.mxu0 }
0x1aaa   :  { %v3231_v31 = vpop.permute.xlu1 %3230 }
0x1aab   :  { %v3233_v7 = vunpack.i.h.bf16 %v3231_v31  ;;  %v3232_v21 = vunpack.i.l.bf16 %v3231_v31  ;;  %v2489_v31 = vunpack.c.l.bf16 %v2802_v37 }
0x1aad   :  { %v2374_v40 = vsel %vm1081_vm7, %v2372_v22, %v3233_v7  ;;  %v2373_v41 = vsel %vm1081_vm7, %v2371_v11, %v3232_v21  ;;  %v2495_v7 = vrot.slane %v2489_v31, %v3458_v25 }
0x1aae   :  { %v2382_v42 = vpack.c.bf16 %v2374_v40, %v2373_v41 }
0x1ab0   :  { %3163 = vmatmul.mubr.msk.bf16.vlgmr.msra.gmra.mxu1 %vm117_vm3, %v2382_v42 }
0x1ab1   :  { %3182 = vmatprep.mubr.msk.bf16.mxu1 %vm3357_vm1, %v3356_v2  ;;  %3175 = vmatpush3.bf16.msra.mxu1 %v3250_v6 }
0x1ab2   :  { %3176 = vmatprep.subr.bf16.mxu1 %v3356_v2 }
0x1ab5   :  { %3177 = vmatpush3.bf16.msra.mxu1 %v3251_v8 }
0x1ab6   :  { %3178 = vmatprep.subr.bf16.mxu1 %v3356_v2 }
0x1ab9   :  { %3179 = vmatpush3.bf16.msra.mxu1 %v3252_v34 }
0x1aba   :  { %3180 = vmatprep.subr.bf16.mxu1 %v3356_v2 }
0x1abd   :  { %3181 = vmatpush3.bf16.msra.mxu1 %v3253_v36 }
0x1b70   :  { %v2436_v44 = vpop.f32.mrf.mxu1 }
0x1b71   :  { %v2437_v46 = vadd.f32 %v2436_v44, %v2386_v43 }
0x1b72   :  { %v3164_v47 = vpop.f32.mrf.mxu1 }
0x1b73   :  { %v2443_v50 = vadd.f32 %v2437_v46, %v3714_v48 }
0x1b74   :  { %v2439_v51 = vpop.f32.mrf.mxu1 }
0x1b75   :  { %v2440_v52 = vadd.f32 %v2439_v51, %v2386_v43  ;;  %v2445_v53 = vsel %vm117_vm3, %v2443_v50, 0.0 }
0x1b76   :  { %2446 = vadd.xlane.f32.xlu0 %v2445_v53  ;;  %v3165_v54 = vpop.f32.mrf.mxu1 }
0x1b77   :  { %v2444_v55 = vadd.f32 %v2440_v52, %v3716_v49  ;;  %v3248_v49 = vld [vmem:[%s3978_s5 + $0x1c] sm:$0xff]  }
0x1b78   :  { %3167 = vmatpush3.bf16.msra.mxu0 %v3248_v49 }
0x1b79   :  { %v2448_v56 = vsel %vm117_vm3, %v2444_v55, 0.0  ;;  %3168 = vmatprep.subr.bf16.mxu0 %v3356_v2  ;;  %v2814_v2 = vld [vmem:[%s3979_s6 + $0x44] sm:$0x1] }
0x1b7a   :  { %2449 = vadd.xlane.f32.xlu1 %v2448_v56  ;;  %v2571_v35 = vunpack.c.l.bf16 %v2814_v2 }
0x1b7c   :  { %3169 = vmatpush3.bf16.msra.mxu0 %v3249_v5  ;;  %v2576_v43 = vrot.slane %v2571_v35, %v3458_v25 }
0x1bff   :  { %v2447_v58 = vpop.xlane.xlu0 %2446 }
0x1c00   :  { %v2451_v59 = vmul.f32 0.03125, %v2447_v58 }
0x1c02   :  { %v2453_v60 = vsub.f32 %v2443_v50, %v2451_v59 }
0x1c03   :  { %v2450_v62 = vpop.xlane.xlu1 %2449 }
0x1c04   :  { %v2452_v63 = vmul.f32 0.03125, %v2450_v62  ;;  %v2455_v0 = vmul.f32 %v2453_v60, %v2453_v60 }
0x1c06   :  { %v2454_v1 = vsub.f32 %v2444_v55, %v2452_v63  ;;  %v2457_v48 = vsel %vm117_vm3, %v2455_v0, 0.0 }
0x1c07   :  { %2458 = vadd.xlane.f32.xlu0 %v2457_v48 }
0x1c08   :  { %v2456_v3 = vmul.f32 %v2454_v1, %v2454_v1 }
0x1c0a   :  { %v2460_v4 = vsel %vm117_vm3, %v2456_v3, 0.0 }
0x1c0b   :  { %2461 = vadd.xlane.f32.xlu0 %v2460_v4 }
0x1c90   :  { %v2459_v61 = vpop.xlane.xlu0 %2458 }
0x1c91   :  { %v2463_v57 = vmul.f32 0.03125, %v2459_v61 }
0x1c93   :  { %v2465_v10 = vadd.f32 1e-05, %v2463_v57 }
0x1c94   :  { %v2462_v38 = vpop.xlane.xlu0 %2461 }
0x1c95   :  { %3326 = vrsqrt.f32 %v2465_v10  ;;  %v2464_v39 = vmul.f32 0.03125, %v2462_v38 }
0x1c97   :  { %v2466_v9 = vadd.f32 1e-05, %v2464_v39 }
0x1c99   :  { %3328 = vrsqrt.f32 %v2466_v9 }
0x1ca2   :  { %v3327_v12 = vpop.eup %3326 }
0x1ca3   :  { %v2469_v14 = vmul.f32 %v3327_v12, %v2453_v60  ;;  %v2820_v12 = vld [vmem:[%s3974_s1 + $0xe] ss:$0 sm:$0xff] }
0x1ca5   :  { %v2475_v20 = vmul.f32 %v2796_v13, %v2469_v14  ;;  %v2821_v14 = vld [vmem:[%s3974_s1 + $0xf] ss:$0 sm:$0xff] }
0x1ca6   :  { %v3329_v15 = vpop.eup %3328 }
0x1ca7   :  { %v2481_v16 = vadd.f32 %v2797_v17, %v2475_v20  ;;  %v2470_v18 = vmul.f32 %v3329_v15, %v2454_v1 }
0x1ca9   :  { %v2476_v19 = vmul.f32 %v2796_v13, %v2470_v18  ;;  %v2490_v23 = vpack.c.bf16 %v2481_v16, %v2481_v16 }
0x1cab   :  { %v2482_v24 = vadd.f32 %v2797_v17, %v2476_v19  ;;  %v2498_v27 = vunpack.c.l.b16 %v2490_v23 }
0x1cad   :  { %v2491_v26 = vpack.c.bf16 %v2482_v24, %v2482_v24  ;;  %v2500_v29 = vrot.slane %v2498_v27, 7 }
0x1caf   :  { %v2499_v28 = vunpack.c.l.b16 %v2491_v26 }
0x1cb1   :  { %v2501_v30 = vrot.slane %v2499_v28, 6 }
0x1cb3   :  { %v2503_v32 = vsel %vm2502_vm9, %v2501_v30, %v2500_v29 }
0x1cb4   :  { %v2504_v33 = vpack.c.b16 %v2503_v32, %v2503_v32 }
0x1cb6   :  { %3171 = vmatmul.mubr.msk.bf16.vlgmr.msra.gmra.mxu0 %vm117_vm3, %v2504_v33 }
0x1d76   :  { %v2554_v21 = vpop.f32.mrf.mxu0 }
0x1d77   :  { %v2555_v11 = vadd.f32 %v2554_v21, %v2495_v7 }
0x1d78   :  { %v3172_v22 = vpop.f32.mrf.mxu0 }
0x1d79   :  { %v2560_v40 = vmax.f32 %v2555_v11, 0.0 }
0x1d7a   :  { %v2557_v41 = vpop.f32.mrf.mxu0 }
0x1d7b   :  { %v2572_v42 = vpack.c.bf16 %v2560_v40, %v2560_v40 }
0x1d7c   :  { %v3173_v45 = vpop.f32.mrf.mxu0 }
0x1d7d   :  { %3183 = vmatmul.mubr.msk.bf16.vlgmr.msra.gmra.mxu1 %vm1300_vm8, %v2572_v42 }
0x1e3d   :  { %v2638_v44 = vpop.f32.mrf.mxu1 }
0x1e3e   :  { %v2639_v46 = vadd.f32 %v2638_v44, %v2576_v43 }
0x1e3f   :  { %v3184_v47 = vpop.f32.mrf.mxu1 }
0x1e40   :  { %v2645_v50 = vrot.slane %v2639_v46, 1  ;;  %v2646_v51 = vrot.slane %v2639_v46, 2 }
0x1e41   :  { %v2641_v52 = vpop.f32.mrf.mxu1 }
0x1e42   :  { %v2650_v53 = vadd.f32 %v2646_v51, %v2482_v24  ;;  %v2649_v54 = vadd.f32 %v2645_v50, %v2481_v16 }
0x1e43   :  { %v3185_v55 = vpop.f32.mrf.mxu1 }
0x1e44   :  { %v2657_v56 = vsel %vm2656_vm10, %v2649_v54, 0.0  ;;  %v2653_v58 = vrot.slane %v2650_v53, 7 }
0x1e45   :  { %2658 = vadd.xlane.f32.xlu0 %v2657_v56 }
0x1e46   :  { %v2661_v59 = vsel %vm2660_vm11, %v2653_v58, 0.0 }
0x1e47   :  { %2662 = vadd.xlane.f32.xlu1 %v2661_v59 }
0x1ece   :  { %v2659_v60 = vpop.xlane.xlu0 %2658 }
0x1ecf   :  { %v2664_v25 = vmul.f32 0.03125, %v2659_v60 }
0x1ed0   :  { %v2663_v62 = vpop.xlane.xlu1 %2662 }
0x1ed1   :  { %v2671_v63 = vsub.f32 %v2649_v54, %v2664_v25  ;;  %v2665_v0 = vmul.f32 0.03125, %v2663_v62 }
0x1ed3   :  { %v2668_v1 = vrot.slane %v2665_v0, 1  ;;  %v2673_v48 = vmul.f32 %v2671_v63, %v2671_v63 }
0x1ed5   :  { %v2672_v3 = vsub.f32 %v2650_v53, %v2668_v1  ;;  %v2680_v4 = vsel %vm2656_vm10, %v2673_v48, 0.0 }
0x1ed6   :  { %2681 = vadd.xlane.f32.xlu0 %v2680_v4 }
0x1ed7   :  { %v2674_v49 = vmul.f32 %v2672_v3, %v2672_v3 }
0x1ed9   :  { %v2677_v5 = vrot.slane %v2674_v49, 7 }
0x1edb   :  { %v2683_v6 = vsel %vm2660_vm11, %v2677_v5, 0.0 }
0x1edc   :  { %2684 = vadd.xlane.f32.xlu1 %v2683_v6 }
0x1f5f   :  { %v2682_v8 = vpop.xlane.xlu0 %2681 }
0x1f60   :  { %v2686_v61 = vmul.f32 0.03125, %v2682_v8 }
0x1f62   :  { %v2688_v57 = vadd.f32 1e-05, %v2686_v61 }
0x1f64   :  { %3330 = vrsqrt.f32 %v2688_v57 }
0x1f65   :  { %v2685_v10 = vpop.xlane.xlu1 %2684 }
0x1f66   :  { %v2687_v38 = vmul.f32 0.03125, %v2685_v10 }
0x1f68   :  { %v2689_v39 = vadd.f32 1e-05, %v2687_v38 }
0x1f6a   :  { %3332 = vrsqrt.f32 %v2689_v39 }
0x1f71   :  { %v3331_v9 = vpop.eup %3330 }
0x1f72   :  { %v2697_v13 = vmul.f32 %v3331_v9, %v2671_v63 }
0x1f74   :  { %v2703_v17 = vmul.f32 %v2820_v12, %v2697_v13 }
0x1f76   :  { %v2709_v20 = vadd.f32 %v2821_v14, %v2703_v17 }
0x1f77   :  { %v3333_v15 = vpop.eup %3332 }
0x1f78   :  { %v2694_v16 = vrot.slane %v3333_v15, 1  ;;  %2711 = vst.msk [vmem:[#allocation2 - $0x7] sm:$0x80] %vm2656_vm10, %v2709_v20 }
0x1f7a   :  { %v2698_v18 = vmul.f32 %v2694_v16, %v2672_v3 }
0x1f7c   :  { %v2704_v19 = vmul.f32 %v2820_v12, %v2698_v18 }
0x1f7e   :  { %v2710_v23 = vadd.f32 %v2821_v14, %v2704_v19 }
0x1f80   :  { %2712 = vst.msk [vmem:[#allocation2 - $0x6] sm:$0x80] %vm2656_vm10, %v2710_v23 }
0x1f81   :  { %3345 = shalt.err (!%p3342_p4)
}
0x1f82   :  { %s3373_s1 = smov 1  }
0x1f83   :  { %2724 = dma.vmem_to_hbm [thread:$0]  %s2719_s17, 32, %s3980_s7, [#allocation3], %s3370_s27, %s3370_s27, %s3373_s1  }
0x1f84   :  { %3354 = dma.done.wait [#allocation3], 32  }
0x1f85   :  { %3355 = vsyncadd [#allocation3], 4294967264 }
0x1f86   :  { %2728 = vsyncpa [#allocation3], 1 }

</bundles_post_ra>
